<compile_context>
chip_gen: v6e
topology: v6e:2x2x1
jax: 0.10.0
libtpu: 0.0.40
codegen_flags: <defaults>
</compile_context>

<pallas_src>
import jax
import jax.numpy as jnp
from jax.experimental import pallas as pl
from jax.experimental.pallas import tpu as pltpu

# ----------------------------------------------------------------------------
# Mini shapes consistent with the module structure (real values in comments).
# ----------------------------------------------------------------------------
N, CIN, H, W = 2, 4, 16, 16        # mini images (real: 3 x 800 x 1216-ish)
COUT = 8                           # mini backbone/FPN channels (real: 256)
POOL = 4                           # mini RoI pool size (real: 7)
FEAT = COUT * POOL * POOL          # flattened box-head input = 128 (real 12544)
HID = 32                           # mini representation size (real: 1024)
NUM_CLASSES = 2                    # FineTunedFasterRCNN(num_classes=2)

PAD = 8                            # sublane-aligned halo offset in conv scratch
RP = 8                             # ROI rows padded to a sublane multiple of 8
HIDP = 128                         # hidden width padded to a full lane tile
OUTP = 128                         # cls(2)+bbox(8) heads fused, padded to 128


# ----------------------------------------------------------------------------
# Kernel 1: fused 3x3 "same" conv + ReLU + adaptive average pool.
# One image per grid step; single im2col matmul (K = 9*Cin) on the MXU.
# ----------------------------------------------------------------------------
def conv_pool_kernel(x_ref, w_ref, b_ref, pmat_ref, o_ref, xpad_ref, patch_ref):
    # x_ref:     (1, H, W, Cin)            bf16   one image
    # w_ref:     (9*Cin, Cout)             bf16   3x3 conv weights, tap-major
    # b_ref:     (1, Cout)                 f32
    # pmat_ref:  (POOL*POOL, H*W)          f32    adaptive-avg-pool matrix
    # o_ref:     (1, POOL*POOL, Cout)      bf16   pooled features (fused epilogue)
    # xpad_ref:  (H+PAD+1, W+PAD+1, Cin)   f32    zero-halo scratch (in-kernel pad)
    # patch_ref: (H*W, 9*Cin)              f32    im2col scratch
    _, hh, ww, cin = x_ref.shape

    # 1) in-kernel zero halo: replaces the host-side jnp.pad (no 2x HBM traffic).
    xpad_ref[...] = jnp.zeros_like(xpad_ref)
    xpad_ref[PAD:PAD + hh, PAD:PAD + ww, :] = x_ref[0].astype(jnp.float32)

    # 2) im2col: 9 shifted taps written side-by-side -> one (H*W, 9*Cin) operand.
    for dy in range(3):
        for dx in range(3):
            t = dy * 3 + dx
            tap = xpad_ref[PAD - 1 + dy:PAD - 1 + dy + hh,
                           PAD - 1 + dx:PAD - 1 + dx + ww, :]
            patch_ref[:, t * cin:(t + 1) * cin] = tap.reshape(hh * ww, cin)

    # 3) single MXU matmul (K = 9*Cin), bf16 operands, f32 accumulation.
    feat = jnp.dot(patch_ref[...].astype(jnp.bfloat16), w_ref[...],
                   preferred_element_type=jnp.float32)
    feat = jnp.maximum(feat + b_ref[...], 0.0)            # (H*W, Cout), f32

    # 4) fused adaptive average pool as a second matmul: no feature-map
    #    writeback / re-read between conv and pooling.
    pooled = jnp.dot(pmat_ref[...], feat, preferred_element_type=jnp.float32)
    o_ref[0] = pooled.astype(o_ref.dtype)                 # (POOL*POOL, Cout)


def conv3x3_relu_pool(x_nhwc_bf16, w_flat_bf16, b_f32, pmat_f32):
    n, h, w, cin = x_nhwc_bf16.shape
    cout = b_f32.shape[1]
    pp = pmat_f32.shape[0]
    # TODO(synk): at real FPN sizes (H,W ~ 200x304, C=256) tile the spatial axis
    # (grid=(N, H//TH), TH multiple of 8 + halo) so blocks fit v7x's 64 MiB VMEM.
    cost = pl.CostEstimate(
        flops=n * (2 * h * w * 9 * cin * cout + 2 * pp * h * w * cout),
        transcendentals=0,
        bytes_accessed=(x_nhwc_bf16.size * 2 + w_flat_bf16.size * 2
                        + b_f32.size * 4 + pmat_f32.size * 4
                        + n * pp * cout * 2))
    return pl.pallas_call(
        conv_pool_kernel,
        out_shape=jax.ShapeDtypeStruct((n, pp, cout), jnp.bfloat16),
        grid=(n,),
        in_specs=[
            pl.BlockSpec((1, h, w, cin), lambda i: (i, 0, 0, 0)),
            pl.BlockSpec((9 * cin, cout), lambda i: (0, 0)),
            pl.BlockSpec((1, cout), lambda i: (0, 0)),
            pl.BlockSpec((pp, h * w), lambda i: (0, 0)),
        ],
        out_specs=pl.BlockSpec((1, pp, cout), lambda i: (i, 0, 0)),
        scratch_shapes=[
            pltpu.VMEM((h + PAD + 1, w + PAD + 1, cin), jnp.float32),
            pltpu.VMEM((h * w, 9 * cin), jnp.float32),
        ],
        compiler_params=pltpu.CompilerParams(
            dimension_semantics=("parallel",),
            vmem_limit_bytes=32 * 1024 * 1024),
        cost_estimate=cost,
    )(x_nhwc_bf16, w_flat_bf16, b_f32, pmat_f32)


# ----------------------------------------------------------------------------
# Kernel 2: fused TwoMLPHead + FastRCNNPredictor.
#   acc = x @ W6 (tiled over FEAT) ; h = relu(acc+b6) ; h = relu(h @ W7 + b7)
#   out = h @ [Wc | Wb] + [bc | bb]        (single lane-dense output slab)
# ----------------------------------------------------------------------------
def roi_head_kernel(x_ref, w6_ref, b6_ref, w7_ref, b7_ref, wp_ref, bp_ref,
                    o_ref, acc_ref):
    k = pl.program_id(1)

    @pl.when(k == 0)
    def _():
        acc_ref[...] = jnp.zeros_like(acc_ref)

    # fc6 contraction, tiled over FEAT (grid axis 1), f32 accumulator in VMEM.
    acc_ref[...] += jnp.dot(x_ref[...], w6_ref[...],
                            preferred_element_type=jnp.float32)

    @pl.when(k == pl.num_programs(1) - 1)
    def _():
        h = jnp.maximum(acc_ref[...] + b6_ref[...], 0.0).astype(jnp.bfloat16)
        h = jnp.dot(h, w7_ref[...], preferred_element_type=jnp.float32)
        h = jnp.maximum(h + b7_ref[...], 0.0).astype(jnp.bfloat16)
        o_ref[...] = (jnp.dot(h, wp_ref[...],
                              preferred_element_type=jnp.float32) + bp_ref[...])


def roi_head(pooled_p, w6p, b6p, w7p, b7p, wpp, bpp, *, tr=RP, tk=128):
    rp, feat = pooled_p.shape
    hidp = w6p.shape[1]
    outp = wpp.shape[1]
    cost = pl.CostEstimate(
        flops=2 * rp * (feat * hidp + hidp * hidp + hidp * outp),
        transcendentals=0,
        bytes_accessed=(pooled_p.size * 2 + w6p.size * 2 + w7p.size * 2
                        + wpp.size * 2
                        + (b6p.size + b7p.size + bpp.size) * 4
                        + rp * outp * 4))
    return pl.pallas_call(
        roi_head_kernel,
        out_shape=jax.ShapeDtypeStruct((rp, outp), jnp.float32),
        grid=(rp // tr, feat // tk),
        in_specs=[
            pl.BlockSpec((tr, tk), lambda r, k: (r, k)),
            pl.BlockSpec((tk, hidp), lambda r, k: (k, 0)),
            pl.BlockSpec((1, hidp), lambda r, k: (0, 0)),
            pl.BlockSpec((hidp, hidp), lambda r, k: (0, 0)),
            pl.BlockSpec((1, hidp), lambda r, k: (0, 0)),
            pl.BlockSpec((hidp, outp), lambda r, k: (0, 0)),
            pl.BlockSpec((1, outp), lambda r, k: (0, 0)),
        ],
        out_specs=pl.BlockSpec((tr, outp), lambda r, k: (r, 0)),
        scratch_shapes=[pltpu.VMEM((tr, hidp), jnp.float32)],
        compiler_params=pltpu.CompilerParams(
            dimension_semantics=("parallel", "arbitrary"),
            vmem_limit_bytes=32 * 1024 * 1024),
        cost_estimate=cost,
    )(pooled_p, w6p, b6p, w7p, b7p, wpp, bpp)


# ----------------------------------------------------------------------------
# Pure-JAX reference mirroring the kernels' bf16-operand / f32-accum numerics.
# ----------------------------------------------------------------------------
def reference_forward(images_nchw, params):
    conv_w, conv_b, w6, b6, w7, b7, wc, bc, wb, bb = params
    bf = lambda a: a.astype(jnp.bfloat16).astype(jnp.float32)
    x = bf(jnp.transpose(images_nchw, (0, 2, 3, 1)))
    n, h, w, _ = x.shape
    cout = conv_w.shape[-1]
    xp = jnp.pad(x, ((0, 0), (1, 1), (1, 1), (0, 0)))
    cwb = bf(conv_w)
    feat = jnp.zeros((n, h, w, cout), jnp.float32)
    for dy in range(3):
        for dx in range(3):
            feat = feat + jnp.einsum("nhwc,cd->nhwd",
                                     xp[:, dy:dy + h, dx:dx + w, :],
                                     cwb[dy, dx])
    feat = jnp.maximum(feat + conv_b.reshape(1, 1, 1, cout), 0.0)
    ph, pw = h // POOL, w // POOL
    pooled = feat.reshape(n, POOL, ph, POOL, pw, cout).mean(axis=(2, 4))
    pooled = bf(pooled.reshape(n, -1))
    hdn = bf(jnp.maximum(pooled @ bf(w6) + b6, 0.0))
    hdn = bf(jnp.maximum(hdn @ bf(w7) + b7, 0.0))
    return hdn @ bf(wc) + bc, hdn @ bf(wb) + bb


if __name__ == "__main__":
    key = jax.random.PRNGKey(0)
    ks = jax.random.split(key, 11)
    images_nchw = jax.random.normal(ks[0], (N, CIN, H, W), jnp.float32)

    # Deterministic synthetic parameters (shapes mirror the module structure).
    conv_w = 0.1 * jax.random.normal(ks[1], (3, 3, CIN, COUT), jnp.float32)
    conv_b = 0.1 * jax.random.normal(ks[2], (1, COUT), jnp.float32)
    w6 = 0.1 * jax.random.normal(ks[3], (FEAT, HID), jnp.float32)
    b6 = 0.1 * jax.random.normal(ks[4], (1, HID), jnp.float32)
    w7 = 0.1 * jax.random.normal(ks[5], (HID, HID), jnp.float32)
    b7 = 0.1 * jax.random.normal(ks[6], (1, HID), jnp.float32)
    wc = 0.1 * jax.random.normal(ks[7], (HID, NUM_CLASSES), jnp.float32)
    bc = 0.1 * jax.random.normal(ks[8], (1, NUM_CLASSES), jnp.float32)
    wb = 0.1 * jax.random.normal(ks[9], (HID, 4 * NUM_CLASSES), jnp.float32)
    bb = 0.1 * jax.random.normal(ks[10], (1, 4 * NUM_CLASSES), jnp.float32)

    # ---- boundary packing: NCHW->NHWC, bf16 matmul operands, f32 biases.
    x_nhwc = jnp.transpose(images_nchw, (0, 2, 3, 1)).astype(jnp.bfloat16)
    w_flat = conv_w.reshape(9 * CIN, COUT).astype(jnp.bfloat16)   # tap-major

    # Adaptive-average-pool matrix (stand-in for RoIAlign -- see TODO above).
    ph, pw = H // POOL, W // POOL
    hh = jnp.arange(H * W) // W
    ww = jnp.arange(H * W) % W
    cell = (hh // ph) * POOL + (ww // pw)
    pmat = (jnp.arange(POOL * POOL)[:, None] == cell[None, :]
            ).astype(jnp.float32) / float(ph * pw)

    # 1) mini backbone/FPN conv + ReLU + fused pooling (Pallas).
    pooled3 = conv3x3_relu_pool(x_nhwc, w_flat, conv_b, pmat)   # (N, P*P, Cout)
    pooled = pooled3.reshape(N, FEAT)                           # bf16

    # 2) TwoMLPHead + FastRCNNPredictor (Pallas): heads concatenated, every
    #    operand padded to (8,128)-friendly sizes, one lane-dense output slab.
    C, C4 = NUM_CLASSES, 4 * NUM_CLASSES
    pooled_p = jnp.zeros((RP, FEAT), jnp.bfloat16).at[:N].set(pooled)
    w6p = jnp.zeros((FEAT, HIDP), jnp.bfloat16).at[:, :HID].set(
        w6.astype(jnp.bfloat16))
    b6p = jnp.zeros((1, HIDP), jnp.float32).at[:, :HID].set(b6)
    w7p = jnp.zeros((HIDP, HIDP), jnp.bfloat16).at[:HID, :HID].set(
        w7.astype(jnp.bfloat16))
    b7p = jnp.zeros((1, HIDP), jnp.float32).at[:, :HID].set(b7)
    wpp = jnp.zeros((HIDP, OUTP), jnp.bfloat16).at[:HID, :C + C4].set(
        jnp.concatenate([wc, wb], axis=1).astype(jnp.bfloat16))
    bpp = jnp.zeros((1, OUTP), jnp.float32).at[:, :C + C4].set(
        jnp.concatenate([bc, bb], axis=1))

    out = roi_head(pooled_p, w6p, b6p, w7p, b7p, wpp, bpp)      # (RP, OUTP) f32
    cls_logits = out[:N, :C]
    box_regression = out[:N, C:C + C4]
    jax.block_until_ready((cls_logits, box_regression))

    # correctness check against a pure-JAX reference (bf16-aware tolerances)
    ref_cls, ref_box = reference_forward(
        images_nchw, (conv_w, conv_b, w6, b6, w7, b7, wc, bc, wb, bb))
    assert cls_logits.shape == (N, NUM_CLASSES)
    assert box_regression.shape == (N, 4 * NUM_CLASSES)
    assert jnp.allclose(cls_logits, ref_cls, atol=2e-2, rtol=2e-2)
    assert jnp.allclose(box_regression, ref_box, atol=2e-2, rtol=2e-2)

    print("KERNEL_OK")
</pallas_src>

<mosaic_0001>
module attributes {stable_mosaic.version = 11 : i64} {
  func.func @conv_pool_kernel(%arg0: i32, %arg1: memref<1x16x16x4xbf16, #tpu.memory_space<vmem>>, %arg2: memref<36x8xbf16, #tpu.memory_space<vmem>>, %arg3: memref<1x8xf32, #tpu.memory_space<vmem>>, %arg4: memref<16x256xf32, #tpu.memory_space<vmem>>, %arg5: memref<1x16x8xbf16, #tpu.memory_space<vmem>>, %arg6: memref<25x25x4xf32, #tpu.memory_space<vmem>>, %arg7: memref<256x36xf32, #tpu.memory_space<vmem>>) attributes {dimension_semantics = [#tpu.dimension_semantics<parallel>], iteration_bounds = array<i64: 2>, scalar_prefetch = 0 : i64, scratch_operands = 2 : i64, tpu.core_type = #tpu.core_type<tc>, window_params = [{transform_indices = @transform_0, window_bounds = array<i64: 1, 16, 16, 4>}, {pipeline_mode = #tpu.pipeline_mode<synchronous>, transform_indices = @transform_1, window_bounds = array<i64: 36, 8>}, {pipeline_mode = #tpu.pipeline_mode<synchronous>, transform_indices = @transform_2, window_bounds = array<i64: 1, 8>}, {pipeline_mode = #tpu.pipeline_mode<synchronous>, transform_indices = @transform_3, window_bounds = array<i64: 16, 256>}, {transform_indices = @transform_4, window_bounds = array<i64: 1, 16, 8>}]} {
    %cst = arith.constant 0.000000e+00 : f32
    %0 = vector.broadcast %cst : f32 to vector<25x25x4xf32>
    %c0 = arith.constant 0 : index
    %c0_0 = arith.constant 0 : index
    %c0_1 = arith.constant 0 : index
    %1 = vector.load %arg6[%c0, %c0_0, %c0_1] : memref<25x25x4xf32, #tpu.memory_space<vmem>>, vector<25x25x4xf32>
    tpu.vector_store %arg6[%c0, %c0_0, %c0_1], %0 {strides = array<i32>} : memref<25x25x4xf32, #tpu.memory_space<vmem>>, vector<25x25x4xf32>,
    %c0_2 = arith.constant 0 : index
    %c0_3 = arith.constant 0 : index
    %c0_4 = arith.constant 0 : index
    %c0_5 = arith.constant 0 : index
    %2 = vector.load %arg1[%c0_2, %c0_3, %c0_4, %c0_5] : memref<1x16x16x4xbf16, #tpu.memory_space<vmem>>, vector<1x16x16x4xbf16>
    %3 = vector.shape_cast %2 : vector<1x16x16x4xbf16> to vector<16x16x4xbf16>
    %4 = arith.extf %3 : vector<16x16x4xbf16> to vector<16x16x4xf32>
    %c8 = arith.constant 8 : index
    %c8_6 = arith.constant 8 : index
    %c0_7 = arith.constant 0 : index
    %5 = vector.load %arg6[%c8, %c8_6, %c0_7] : memref<25x25x4xf32, #tpu.memory_space<vmem>>, vector<16x16x4xf32>
    tpu.vector_store %arg6[%c8, %c8_6, %c0_7], %4 {strides = array<i32>} : memref<25x25x4xf32, #tpu.memory_space<vmem>>, vector<16x16x4xf32>,
    %c7 = arith.constant 7 : index
    %c7_8 = arith.constant 7 : index
    %c0_9 = arith.constant 0 : index
    %6 = vector.load %arg6[%c7, %c7_8, %c0_9] : memref<25x25x4xf32, #tpu.memory_space<vmem>>, vector<16x16x4xf32>
    %7 = vector.shape_cast %6 : vector<16x16x4xf32> to vector<256x4xf32>
    %c0_10 = arith.constant 0 : index
    %c0_11 = arith.constant 0 : index
    %8 = vector.load %arg7[%c0_10, %c0_11] : memref<256x36xf32, #tpu.memory_space<vmem>>, vector<256x4xf32>
    tpu.vector_store %arg7[%c0_10, %c0_11], %7 {strides = array<i32>} : memref<256x36xf32, #tpu.memory_space<vmem>>, vector<256x4xf32>,
    %c7_12 = arith.constant 7 : index
    %c8_13 = arith.constant 8 : index
    %c0_14 = arith.constant 0 : index
    %9 = vector.load %arg6[%c7_12, %c8_13, %c0_14] : memref<25x25x4xf32, #tpu.memory_space<vmem>>, vector<16x16x4xf32>
    %10 = vector.shape_cast %9 : vector<16x16x4xf32> to vector<256x4xf32>
    %c0_15 = arith.constant 0 : index
    %c4 = arith.constant 4 : index
    %11 = vector.load %arg7[%c0_15, %c4] : memref<256x36xf32, #tpu.memory_space<vmem>>, vector<256x4xf32>
    tpu.vector_store %arg7[%c0_15, %c4], %10 {strides = array<i32>} : memref<256x36xf32, #tpu.memory_space<vmem>>, vector<256x4xf32>,
    %c7_16 = arith.constant 7 : index
    %c9 = arith.constant 9 : index
    %c0_17 = arith.constant 0 : index
    %12 = vector.load %arg6[%c7_16, %c9, %c0_17] : memref<25x25x4xf32, #tpu.memory_space<vmem>>, vector<16x16x4xf32>
    %13 = vector.shape_cast %12 : vector<16x16x4xf32> to vector<256x4xf32>
    %c0_18 = arith.constant 0 : index
    %c8_19 = arith.constant 8 : index
    %14 = vector.load %arg7[%c0_18, %c8_19] : memref<256x36xf32, #tpu.memory_space<vmem>>, vector<256x4xf32>
    tpu.vector_store %arg7[%c0_18, %c8_19], %13 {strides = array<i32>} : memref<256x36xf32, #tpu.memory_space<vmem>>, vector<256x4xf32>,
    %c8_20 = arith.constant 8 : index
    %c7_21 = arith.constant 7 : index
    %c0_22 = arith.constant 0 : index
    %15 = vector.load %arg6[%c8_20, %c7_21, %c0_22] : memref<25x25x4xf32, #tpu.memory_space<vmem>>, vector<16x16x4xf32>
    %16 = vector.shape_cast %15 : vector<16x16x4xf32> to vector<256x4xf32>
    %c0_23 = arith.constant 0 : index
    %c12 = arith.constant 12 : index
    %17 = vector.load %arg7[%c0_23, %c12] : memref<256x36xf32, #tpu.memory_space<vmem>>, vector<256x4xf32>
    tpu.vector_store %arg7[%c0_23, %c12], %16 {strides = array<i32>} : memref<256x36xf32, #tpu.memory_space<vmem>>, vector<256x4xf32>,
    %c8_24 = arith.constant 8 : index
    %c8_25 = arith.constant 8 : index
    %c0_26 = arith.constant 0 : index
    %18 = vector.load %arg6[%c8_24, %c8_25, %c0_26] : memref<25x25x4xf32, #tpu.memory_space<vmem>>, vector<16x16x4xf32>
    %19 = vector.shape_cast %18 : vector<16x16x4xf32> to vector<256x4xf32>
    %c0_27 = arith.constant 0 : index
    %c16 = arith.constant 16 : index
    %20 = vector.load %arg7[%c0_27, %c16] : memref<256x36xf32, #tpu.memory_space<vmem>>, vector<256x4xf32>
    tpu.vector_store %arg7[%c0_27, %c16], %19 {strides = array<i32>} : memref<256x36xf32, #tpu.memory_space<vmem>>, vector<256x4xf32>,
    %c8_28 = arith.constant 8 : index
    %c9_29 = arith.constant 9 : index
    %c0_30 = arith.constant 0 : index
    %21 = vector.load %arg6[%c8_28, %c9_29, %c0_30] : memref<25x25x4xf32, #tpu.memory_space<vmem>>, vector<16x16x4xf32>
    %22 = vector.shape_cast %21 : vector<16x16x4xf32> to vector<256x4xf32>
    %c0_31 = arith.constant 0 : index
    %c20 = arith.constant 20 : index
    %23 = vector.load %arg7[%c0_31, %c20] : memref<256x36xf32, #tpu.memory_space<vmem>>, vector<256x4xf32>
    tpu.vector_store %arg7[%c0_31, %c20], %22 {strides = array<i32>} : memref<256x36xf32, #tpu.memory_space<vmem>>, vector<256x4xf32>,
    %c9_32 = arith.constant 9 : index
    %c7_33 = arith.constant 7 : index
    %c0_34 = arith.constant 0 : index
    %24 = vector.load %arg6[%c9_32, %c7_33, %c0_34] : memref<25x25x4xf32, #tpu.memory_space<vmem>>, vector<16x16x4xf32>
    %25 = vector.shape_cast %24 : vector<16x16x4xf32> to vector<256x4xf32>
    %c0_35 = arith.constant 0 : index
    %c24 = arith.constant 24 : index
    %26 = vector.load %arg7[%c0_35, %c24] : memref<256x36xf32, #tpu.memory_space<vmem>>, vector<256x4xf32>
    tpu.vector_store %arg7[%c0_35, %c24], %25 {strides = array<i32>} : memref<256x36xf32, #tpu.memory_space<vmem>>, vector<256x4xf32>,
    %c9_36 = arith.constant 9 : index
    %c8_37 = arith.constant 8 : index
    %c0_38 = arith.constant 0 : index
    %27 = vector.load %arg6[%c9_36, %c8_37, %c0_38] : memref<25x25x4xf32, #tpu.memory_space<vmem>>, vector<16x16x4xf32>
    %28 = vector.shape_cast %27 : vector<16x16x4xf32> to vector<256x4xf32>
    %c0_39 = arith.constant 0 : index
    %c28 = arith.constant 28 : index
    %29 = vector.load %arg7[%c0_39, %c28] : memref<256x36xf32, #tpu.memory_space<vmem>>, vector<256x4xf32>
    tpu.vector_store %arg7[%c0_39, %c28], %28 {strides = array<i32>} : memref<256x36xf32, #tpu.memory_space<vmem>>, vector<256x4xf32>,
    %c9_40 = arith.constant 9 : index
    %c9_41 = arith.constant 9 : index
    %c0_42 = arith.constant 0 : index
    %30 = vector.load %arg6[%c9_40, %c9_41, %c0_42] : memref<25x25x4xf32, #tpu.memory_space<vmem>>, vector<16x16x4xf32>
    %31 = vector.shape_cast %30 : vector<16x16x4xf32> to vector<256x4xf32>
    %c0_43 = arith.constant 0 : index
    %c32 = arith.constant 32 : index
    %32 = vector.load %arg7[%c0_43, %c32] : memref<256x36xf32, #tpu.memory_space<vmem>>, vector<256x4xf32>
    tpu.vector_store %arg7[%c0_43, %c32], %31 {strides = array<i32>} : memref<256x36xf32, #tpu.memory_space<vmem>>, vector<256x4xf32>,
    %c0_44 = arith.constant 0 : index
    %c0_45 = arith.constant 0 : index
    %33 = vector.load %arg7[%c0_44, %c0_45] : memref<256x36xf32, #tpu.memory_space<vmem>>, vector<256x36xf32>
    %34 = arith.truncf %33 : vector<256x36xf32> to vector<256x36xbf16>
    %c0_46 = arith.constant 0 : index
    %c0_47 = arith.constant 0 : index
    %35 = vector.load %arg2[%c0_46, %c0_47] : memref<36x8xbf16, #tpu.memory_space<vmem>>, vector<36x8xbf16>
    %cst_48 = arith.constant dense<0.000000e+00> : vector<256x8xf32>
    %36 = tpu.matmul %34, %35, %cst_48 {dimension_numbers = #tpu.dot_dimension_numbers<[1], [0], [0], [1], [0, 0, 1, 1], [], []>} : vector<256x36xbf16>, vector<36x8xbf16>, vector<256x8xf32> -> vector<256x8xf32>
    %c0_49 = arith.constant 0 : index
    %c0_50 = arith.constant 0 : index
    %37 = vector.load %arg3[%c0_49, %c0_50] : memref<1x8xf32, #tpu.memory_space<vmem>>, vector<1x8xf32>
    %38 = vector.broadcast %37 : vector<1x8xf32> to vector<256x8xf32>
    %39 = arith.addf %36, %38 : vector<256x8xf32>
    %cst_51 = arith.constant 0.000000e+00 : f32
    %40 = vector.broadcast %cst_51 : f32 to vector<256x8xf32>
    %41 = arith.maximumf %39, %40 : vector<256x8xf32>
    %c0_52 = arith.constant 0 : index
    %c0_53 = arith.constant 0 : index
    %42 = vector.load %arg4[%c0_52, %c0_53] : memref<16x256xf32, #tpu.memory_space<vmem>>, vector<16x256xf32>
    %cst_54 = arith.constant dense<0.000000e+00> : vector<16x8xf32>
    %43 = tpu.matmul %42, %41, %cst_54 {dimension_numbers = #tpu.dot_dimension_numbers<[1], [0], [0], [1], [0, 0, 1, 1], [], []>} : vector<16x256xf32>, vector<256x8xf32>, vector<16x8xf32> -> vector<16x8xf32>
    %44 = arith.truncf %43 : vector<16x8xf32> to vector<16x8xbf16>
    %c0_55 = arith.constant 0 : index
    %c0_56 = arith.constant 0 : index
    %c0_57 = arith.constant 0 : index
    %45 = vector.load %arg5[%c0_55, %c0_56, %c0_57] : memref<1x16x8xbf16, #tpu.memory_space<vmem>>, vector<1x16x8xbf16>
    %46 = vector.shape_cast %45 : vector<1x16x8xbf16> to vector<16x8xbf16>
    %47 = vector.shape_cast %44 : vector<16x8xbf16> to vector<1x16x8xbf16>
    tpu.vector_store %arg5[%c0_55, %c0_56, %c0_57], %47 {strides = array<i32>} : memref<1x16x8xbf16, #tpu.memory_space<vmem>>, vector<1x16x8xbf16>,
    return
  }
  func.func @transform_0(%arg0: i32) -> (i32, i32, i32, i32) {
    %c0_i32 = arith.constant 0 : i32
    %c0_i32_0 = arith.constant 0 : i32
    %c0_i32_1 = arith.constant 0 : i32
    %c0_i32_2 = arith.constant 0 : i32
    return %arg0, %c0_i32, %c0_i32_0, %c0_i32_1 : i32, i32, i32, i32
  }
  func.func @transform_1(%arg0: i32) -> (i32, i32) {
    %c0_i32 = arith.constant 0 : i32
    %c0_i32_0 = arith.constant 0 : i32
    %c0_i32_1 = arith.constant 0 : i32
    return %c0_i32, %c0_i32_0 : i32, i32
  }
  func.func @transform_2(%arg0: i32) -> (i32, i32) {
    %c0_i32 = arith.constant 0 : i32
    %c0_i32_0 = arith.constant 0 : i32
    %c0_i32_1 = arith.constant 0 : i32
    return %c0_i32, %c0_i32_0 : i32, i32
  }
  func.func @transform_3(%arg0: i32) -> (i32, i32) {
    %c0_i32 = arith.constant 0 : i32
    %c0_i32_0 = arith.constant 0 : i32
    %c0_i32_1 = arith.constant 0 : i32
    return %c0_i32, %c0_i32_0 : i32, i32
  }
  func.func @transform_4(%arg0: i32) -> (i32, i32, i32) {
    %c0_i32 = arith.constant 0 : i32
    %c0_i32_0 = arith.constant 0 : i32
    %c0_i32_1 = arith.constant 0 : i32
    return %arg0, %c0_i32, %c0_i32_0 : i32, i32, i32
  }
}

</mosaic_0001>

<bundles_post_ra>
// kernel: tpu_custom_call.1
= control target key start
LH: loop header
LB: loop body
LE: loop exit
PB: predicated region body
PF: predicated region fallthrough
CT: control target
= control target key end

     0   :  { %s2748_s15 = smov 0   ;;  %s3939_s0 = inlined_call_operand.vmem [shape: bf16[2,16,16,4], index: 0, kind: input, shape index: {}]   ;;  %s3940_s1 = inlined_call_operand.vmem [shape: bf16[36,8], index: 1, kind: input, shape index: {}]   ;;  %s3941_s2 = inlined_call_operand.vmem [shape: f32[1,8], index: 2, kind: input, shape index: {}]   ;;  %s3942_s3 = inlined_call_operand.vmem [shape: f32[16,256], index: 3, kind: input, shape index: {}]   ;;  %s3943_s4 = inlined_call_operand.vmem [shape: bf16[2,16,8], index: 4, kind: output, shape index: {}]  }
   0x1 LB: > { %s2474_s16 = sadd.s32 4294967295, %s2712_s15   ;;  %p2478_p0 = scmp.ge.s32.totalorder %s2712_s15, 1  ;;  %s2712_s15 = sphi %s2748_s15, %s14_s15  }
   0x2   : > { %p162_p1 = scmp.lt.s32.totalorder %s2712_s15, 3 }
   0x4   : > { %p163_p2 = pnand %p2478_p0, %p162_p1 }
   0x5   : > { %p188_p3 = scmp.lt.s32.totalorder (!%p163_p2), %s2474_s16, 1  ;;  %s2715_s21 = smov (!%p163_p2), 4  }
   0x6   : > { %166 = sbr.rel (%p163_p2) target bundleno = 1122 (0x462), region = 36  ;;  %s2716_s22 = smov (!%p163_p2), 8  }
   0x7   : > { %s2717_s23 = smov (!%p163_p2), 12   ;;  %s2718_s24 = smov (!%p163_p2), 16  }
   0x8   : > { %s2719_s25 = smov (!%p163_p2), 20   ;;  %s2720_s26 = smov (!%p163_p2), 24  }
   0x9   : > { %s2721_s27 = smov (!%p163_p2), 28   ;;  %s2722_s30 = smov (!%p163_p2), 32  }
   0xb   : > { %vm199_vm0 = vcmask 31744   ;;  %vm203_vm1 = vcmask 24576   ;;  %v2714_v0 = vmov 0.0   ;;  %s3945_s16 = smov (!%p188_p3, %s2474_s16), 1  ;;  %vm2132_vm2 = vcmask 1041408   ;;  %v2704_v54 = vld [vmem:[%s3940_s1 + $0x8] sm:$0xff]  }
   0xc   : > { %230 = vst.msk [vmem:[#allocation2 + $0xe8] sm:$0xff] %vm199_vm0, %v2714_v0  ;;  %229 = vst.msk [vmem:[#allocation2 + $0xe0] sm:$0xff] %vm199_vm0, %v2714_v0  ;;  %s2507_s17 = sshll.u32 %s3945_s16, 7  ;;  %v2703_v51 = vld [vmem:[%s3940_s1 + $0x10] ss:$0 sps:$4 sm:$0x33]  }
   0xd   : > { %231 = vst.msk [vmem:[#allocation2 + $0xf0] sm:$0xff] %vm199_vm0, %v2714_v0  ;;  %233 = vst.msk [vmem:[#allocation2 + $0x100] sm:$0xff] %vm199_vm0, %v2714_v0  ;;  %s2910_s20 = scalar_lea.vmem %s3939_s0, %s2507_s17  ;;  %2685 = vmatprep.subr.msk.bf16.mxu0 %vm2132_vm2, %v2703_v51  ;;  %v2134_v53 = vsel %vm2132_vm2, %v2703_v51, 0  ;;  %v2705_v55 = vld [vmem:[%s3940_s1] sm:$0xff]   ;;  %vm623_vm3 = vcmask 64544   ;;  %vm816_vm4 = vcmask 97344  }
   0xe   : > { %234 = vst.msk [vmem:[#allocation2 + $0x108] sm:$0xff] %vm199_vm0, %v2714_v0  ;;  %235 = vst.msk [vmem:[#allocation2 + $0x110] sm:$0xff] %vm199_vm0, %v2714_v0  ;;  %v2512_v1 = vld [vmem:[%s2910_s20] sm:$0xff]   ;;  %v2575_v2 = vld [vmem:[%s2910_s20 + $0x8] sm:$0xff]   ;;  %2648 = vmatpush3.bf16.msra.mxu0 %v2134_v53  ;;  %vm1009_vm5 = vcmask 130144   ;;  %vm1202_vm6 = vcmask 162944  }
   0xf   : > { %237 = vst.msk [vmem:[#allocation2 + $0x120] sm:$0xff] %vm199_vm0, %v2714_v0  ;;  %238 = vst.msk [vmem:[#allocation2 + $0x128] sm:$0xff] %vm199_vm0, %v2714_v0  ;;  %v2576_v3 = vld [vmem:[%s2910_s20 + $0x10] sm:$0xff]   ;;  %v2513_v6 = vunpack.c.l.bf16 %v2512_v1  ;;  %v2514_v7 = vunpack.c.h.bf16 %v2512_v1  ;;  %v2517_v8 = vunpack.c.l.bf16 %v2575_v2  ;;  %v2518_v9 = vunpack.c.h.bf16 %v2575_v2  ;;  %v2577_v12 = vld [vmem:[%s2910_s20 + $0x18] sm:$0xff]   ;;  %2649 = vmatprep.subr.bf16.mxu0 %v2704_v54 }
  0x10   : > { %239 = vst.msk [vmem:[#allocation2 + $0x130] sm:$0xff] %vm199_vm0, %v2714_v0  ;;  %241 = vst.msk [vmem:[#allocation2 + $0x140] sm:$0xff] %vm199_vm0, %v2714_v0  ;;  %v2521_v10 = vunpack.c.l.bf16 %v2576_v3  ;;  %v2522_v11 = vunpack.c.h.bf16 %v2576_v3  ;;  %v2578_v13 = vld [vmem:[%s2910_s20 + $0x20] sm:$0xff]   ;;  %v2525_v15 = vunpack.c.l.bf16 %v2577_v12  ;;  %v2526_v16 = vunpack.c.h.bf16 %v2577_v12  ;;  %v2579_v36 = vld [vmem:[%s2910_s20 + $0x28] sm:$0xff]  }
  0x11   : > { %242 = vst.msk [vmem:[#allocation2 + $0x148] sm:$0xff] %vm199_vm0, %v2714_v0  ;;  %243 = vst.msk [vmem:[#allocation2 + $0x150] sm:$0xff] %vm199_vm0, %v2714_v0  ;;  %v2529_v17 = vunpack.c.l.bf16 %v2578_v13  ;;  %v2530_v18 = vunpack.c.h.bf16 %v2578_v13  ;;  %v2533_v37 = vunpack.c.l.bf16 %v2579_v36  ;;  %v2534_v38 = vunpack.c.h.bf16 %v2579_v36  ;;  %v2580_v45 = vld [vmem:[%s2910_s20 + $0x30] sm:$0xff]   ;;  %v2581_v58 = vld [vmem:[%s2910_s20 + $0x38] sm:$0xff]  }
  0x12   : > { %245 = vst.msk [vmem:[#allocation2 + $0x160] sm:$0xff] %vm199_vm0, %v2714_v0  ;;  %246 = vst.msk [vmem:[#allocation2 + $0x168] sm:$0xff] %vm199_vm0, %v2714_v0  ;;  %v2537_v46 = vunpack.c.l.bf16 %v2580_v45  ;;  %v2538_v47 = vunpack.c.h.bf16 %v2580_v45  ;;  %2650 = vmatpush3.bf16.msra.mxu0 %v2704_v54  ;;  %v2541_v59 = vunpack.c.l.bf16 %v2581_v58  ;;  %v2542_v60 = vunpack.c.h.bf16 %v2581_v58  ;;  %v2582_v3 = vld [vmem:[%s2910_s20 + $0x40] sm:$0xff]   ;;  %v2584_v51 = vld [vmem:[%s2910_s20 + $0x50] sm:$0xff]  }
  0x13   : > { %247 = vst.msk [vmem:[#allocation2 + $0x170] sm:$0xff] %vm199_vm0, %v2714_v0  ;;  %249 = vst.msk [vmem:[#allocation2 + $0x180] sm:$0xff] %vm199_vm0, %v2714_v0  ;;  %v463_v4 = vld [vmem:[#allocation2 + $0xe8] sm:$0xff]  ;;  %2651 = vmatprep.subr.bf16.mxu0 %v2705_v55  ;;  %vm1395_vm7 = vcmask 195744   ;;  %vm1589_vm8 = vcmask 228544   ;;  %vm1782_vm9 = vcmask 261344   ;;  %v2553_v53 = vunpack.c.l.bf16 %v2584_v51 }
  0x14   : > { %250 = vst.msk [vmem:[#allocation2 + $0x188] sm:$0xff] %vm199_vm0, %v2714_v0  ;;  %251 = vst.msk [vmem:[#allocation2 + $0x190] sm:$0xff] %vm199_vm0, %v2714_v0  ;;  %527 = vrot.lane.b32.xlu0 %v463_v4, %s2715_s21  ;;  %v464_v14 = vld [vmem:[#allocation2 + $0xf0] sm:$0xff]  ;;  %v399_v19 = vld [vmem:[#allocation2 + $0xe7] sm:$0xff]  ;;  %v2545_v4 = vunpack.c.l.bf16 %v2582_v3  ;;  %v2554_v54 = vunpack.c.h.bf16 %v2584_v51  ;;  %vm1975_vm10 = vcmask 294144   ;;  %vm2083_vm11 = vcmask 293888  }
  0x15   : > { %253 = vst.msk [vmem:[#allocation2 + $0x1a0] sm:$0xff] %vm199_vm0, %v2714_v0  ;;  %254 = vst.msk [vmem:[#allocation2 + $0x1a8] sm:$0xff] %vm199_vm0, %v2714_v0  ;;  %v400_v20 = vld [vmem:[#allocation2 + $0xef] sm:$0xff]  ;;  %vm2416_vm12 = vcmask 60416  }
  0x16   : > { %255 = vst.msk [vmem:[#allocation2 + $0x1b0] sm:$0xff] %vm199_vm0, %v2714_v0  ;;  %257 = vst.msk [vmem:[#allocation2 + $0x1c0] sm:$0xff] %vm199_vm0, %v2714_v0  ;;  %v656_v21 = vld [vmem:[#allocation2 + $0xe9] sm:$0xff]  ;;  %2652 = vmatpush3.bf16.msra.mxu0 %v2705_v55 }
  0x17   : > { %258 = vst.msk [vmem:[#allocation2 + $0x1c8] sm:$0xff] %vm199_vm0, %v2714_v0  ;;  %259 = vst.msk [vmem:[#allocation2 + $0x1d0] sm:$0xff] %vm199_vm0, %v2714_v0 }
  0x18   : > { %261 = vst.msk [vmem:[#allocation2 + $0x1e0] sm:$0xff] %vm199_vm0, %v2714_v0  ;;  %262 = vst.msk [vmem:[#allocation2 + $0x1e8] sm:$0xff] %vm199_vm0, %v2714_v0  ;;  %529 = vrot.lane.b32.xlu0 %v464_v14, %s2715_s21 }
  0x19   : > { %263 = vst.msk [vmem:[#allocation2 + $0x1f0] sm:$0xff] %vm199_vm0, %v2714_v0  ;;  %265 = vst.msk [vmem:[#allocation2 + $0x200] sm:$0xff] %vm199_vm0, %v2714_v0 }
  0x1a   : > { %266 = vst.msk [vmem:[#allocation2 + $0x208] sm:$0xff] %vm199_vm0, %v2714_v0  ;;  %267 = vst.msk [vmem:[#allocation2 + $0x210] sm:$0xff] %vm199_vm0, %v2714_v0 }
  0x1b   : > { %269 = vst.msk [vmem:[#allocation2 + $0x220] sm:$0xff] %vm199_vm0, %v2714_v0  ;;  %270 = vst.msk [vmem:[#allocation2 + $0x228] sm:$0xff] %vm199_vm0, %v2714_v0 }
  0x1c   : > { %271 = vst.msk [vmem:[#allocation2 + $0x230] sm:$0xff] %vm199_vm0, %v2714_v0  ;;  %273 = vst.msk [vmem:[#allocation2 + $0x240] sm:$0xff] %vm199_vm0, %v2714_v0  ;;  %720 = vrot.lane.b32.xlu0 %v656_v21, %s2716_s22 }
  0x1d   : > { %274 = vst.msk [vmem:[#allocation2 + $0x248] sm:$0xff] %vm199_vm0, %v2714_v0  ;;  %275 = vst.msk [vmem:[#allocation2 + $0x250] sm:$0xff] %vm199_vm0, %v2714_v0 }
  0x1e   : > { %277 = vst.msk [vmem:[#allocation2 + $0x260] sm:$0xff] %vm199_vm0, %v2714_v0  ;;  %278 = vst.msk [vmem:[#allocation2 + $0x268] sm:$0xff] %vm199_vm0, %v2714_v0 }
  0x1f   : > { %279 = vst.msk [vmem:[#allocation2 + $0x270] sm:$0xff] %vm199_vm0, %v2714_v0  ;;  %281 = vst.msk [vmem:[#allocation2 + $0x280] sm:$0xff] %vm199_vm0, %v2714_v0 }
  0x20   : > { %282 = vst.msk [vmem:[#allocation2 + $0x288] sm:$0xff] %vm199_vm0, %v2714_v0  ;;  %283 = vst.msk [vmem:[#allocation2 + $0x290] sm:$0xff] %vm199_vm0, %v2714_v0 }
  0x21   : > { %285 = vst.msk [vmem:[#allocation2 + $0x2a0] sm:$0xff] %vm199_vm0, %v2714_v0  ;;  %286 = vst.msk [vmem:[#allocation2 + $0x2a8] sm:$0xff] %vm199_vm0, %v2714_v0 }
  0x22   : > { %287 = vst.msk [vmem:[#allocation2 + $0x2b0] sm:$0xff] %vm199_vm0, %v2714_v0  ;;  %289 = vst.msk [vmem:[#allocation2 + $0x2c0] sm:$0xff] %vm199_vm0, %v2714_v0 }
  0x23   : > { %290 = vst.msk [vmem:[#allocation2 + $0x2c8] sm:$0xff] %vm199_vm0, %v2714_v0  ;;  %291 = vst.msk [vmem:[#allocation2 + $0x2d0] sm:$0xff] %vm199_vm0, %v2714_v0 }
  0x24   : > { %293 = vst.msk [vmem:[#allocation2 + $0x2e0] sm:$0xff] %vm199_vm0, %v2714_v0  ;;  %294 = vst.msk [vmem:[#allocation2 + $0x2e8] sm:$0xff] %vm199_vm0, %v2714_v0 }
  0x25   : > { %295 = vst.msk [vmem:[#allocation2 + $0x2f0] sm:$0xff] %vm199_vm0, %v2714_v0  ;;  %297 = vst.msk [vmem:[#allocation2 + $0x300] sm:$0xff] %vm199_vm0, %v2714_v0 }
  0x26   : > { %298 = vst.msk [vmem:[#allocation2 + $0x308] sm:$0xff] %vm199_vm0, %v2714_v0  ;;  %299 = vst.msk [vmem:[#allocation2 + $0x310] sm:$0xff] %vm199_vm0, %v2714_v0 }
  0x27   : > { %232 = vst.msk [vmem:[#allocation2 + $0xf8] sm:$0x1] %vm203_vm1, %v2714_v0  ;;  %236 = vst.msk [vmem:[#allocation2 + $0x118] sm:$0x1] %vm203_vm1, %v2714_v0 }
  0x28   : > { %240 = vst.msk [vmem:[#allocation2 + $0x138] sm:$0x1] %vm203_vm1, %v2714_v0  ;;  %244 = vst.msk [vmem:[#allocation2 + $0x158] sm:$0x1] %vm203_vm1, %v2714_v0 }
  0x29   : > { %248 = vst.msk [vmem:[#allocation2 + $0x178] sm:$0x1] %vm203_vm1, %v2714_v0  ;;  %252 = vst.msk [vmem:[#allocation2 + $0x198] sm:$0x1] %vm203_vm1, %v2714_v0 }
  0x2a   : > { %256 = vst.msk [vmem:[#allocation2 + $0x1b8] sm:$0x1] %vm203_vm1, %v2714_v0  ;;  %260 = vst.msk [vmem:[#allocation2 + $0x1d8] sm:$0x1] %vm203_vm1, %v2714_v0 }
  0x2b   : > { %264 = vst.msk [vmem:[#allocation2 + $0x1f8] sm:$0x1] %vm203_vm1, %v2714_v0  ;;  %268 = vst.msk [vmem:[#allocation2 + $0x218] sm:$0x1] %vm203_vm1, %v2714_v0 }
  0x2c   : > { %272 = vst.msk [vmem:[#allocation2 + $0x238] sm:$0x1] %vm203_vm1, %v2714_v0  ;;  %276 = vst.msk [vmem:[#allocation2 + $0x258] sm:$0x1] %vm203_vm1, %v2714_v0 }
  0x2d   : > { %280 = vst.msk [vmem:[#allocation2 + $0x278] sm:$0x1] %vm203_vm1, %v2714_v0  ;;  %284 = vst.msk [vmem:[#allocation2 + $0x298] sm:$0x1] %vm203_vm1, %v2714_v0 }
  0x2e   : > { %288 = vst.msk [vmem:[#allocation2 + $0x2b8] sm:$0x1] %vm203_vm1, %v2714_v0  ;;  %292 = vst.msk [vmem:[#allocation2 + $0x2d8] sm:$0x1] %vm203_vm1, %v2714_v0  ;;  %v657_v5 = vld [vmem:[#allocation2 + $0xf1] sm:$0xff] }
  0x2f   : > { %296 = vst.msk [vmem:[#allocation2 + $0x2f8] sm:$0x1] %vm203_vm1, %v2714_v0  ;;  %300 = vst.msk [vmem:[#allocation2 + $0x318] sm:$0x1] %vm203_vm1, %v2714_v0  ;;  %722 = vrot.lane.b32.xlu1 %v657_v5, %s2716_s22  ;;  %v2546_v5 = vunpack.c.h.bf16 %v2582_v3 }
  0x30   : > { %366 = vst.msk [vmem:[#allocation2 + $0x108] sm:$0xff] %vm199_vm0, %v2513_v6  ;;  %367 = vst.msk [vmem:[#allocation2 + $0x110] sm:$0xff] %vm199_vm0, %v2514_v7 }
  0x31   : > { %368 = vst.msk [vmem:[#allocation2 + $0x128] sm:$0xff] %vm199_vm0, %v2517_v8  ;;  %369 = vst.msk [vmem:[#allocation2 + $0x130] sm:$0xff] %vm199_vm0, %v2518_v9 }
  0x32   : > { %370 = vst.msk [vmem:[#allocation2 + $0x148] sm:$0xff] %vm199_vm0, %v2521_v10  ;;  %371 = vst.msk [vmem:[#allocation2 + $0x150] sm:$0xff] %vm199_vm0, %v2522_v11 }
  0x33   : > { %431 = vst.msk [vmem:[#allocation3] sm:$0xff] %vm199_vm0, %v399_v19  ;;  %432 = vst.msk [vmem:[#allocation3 + $0x8] sm:$0xff] %vm199_vm0, %v400_v20 }
  0x34   : > { %372 = vst.msk [vmem:[#allocation2 + $0x168] sm:$0xff] %vm199_vm0, %v2525_v15  ;;  %373 = vst.msk [vmem:[#allocation2 + $0x170] sm:$0xff] %vm199_vm0, %v2526_v16 }
  0x35   : > { %374 = vst.msk [vmem:[#allocation2 + $0x188] sm:$0xff] %vm199_vm0, %v2529_v17  ;;  %375 = vst.msk [vmem:[#allocation2 + $0x190] sm:$0xff] %vm199_vm0, %v2530_v18 }
  0x36   : > { %376 = vst.msk [vmem:[#allocation2 + $0x1a8] sm:$0xff] %vm199_vm0, %v2533_v37  ;;  %377 = vst.msk [vmem:[#allocation2 + $0x1b0] sm:$0xff] %vm199_vm0, %v2534_v38 }
  0x37   : > { %v465_v22 = vld [vmem:[#allocation2 + $0x108] sm:$0xff]  ;;  %v466_v26 = vld [vmem:[#allocation2 + $0x110] sm:$0xff]  ;;  %378 = vst.msk [vmem:[#allocation2 + $0x1c8] sm:$0xff] %vm199_vm0, %v2537_v46  ;;  %379 = vst.msk [vmem:[#allocation2 + $0x1d0] sm:$0xff] %vm199_vm0, %v2538_v47 }
  0x38   : > { %531 = vrot.lane.b32.xlu1 %v465_v22, %s2715_s21  ;;  %v658_v23 = vld [vmem:[#allocation2 + $0x109] sm:$0xff]  ;;  %v659_v31 = vld [vmem:[#allocation2 + $0x111] sm:$0xff]  ;;  %380 = vst.msk [vmem:[#allocation2 + $0x1e8] sm:$0xff] %vm199_vm0, %v2541_v59  ;;  %381 = vst.msk [vmem:[#allocation2 + $0x1f0] sm:$0xff] %vm199_vm0, %v2542_v60 }
  0x39   : > { %v849_v24 = vld [vmem:[#allocation2 + $0x107] sm:$0xff]  ;;  %v850_v25 = vld [vmem:[#allocation2 + $0x10f] sm:$0xff]  ;;  %724 = vrot.lane.b32.xlu0 %v658_v23, %s2716_s22  ;;  %382 = vst.msk [vmem:[#allocation2 + $0x208] sm:$0xff] %vm199_vm0, %v2545_v4  ;;  %383 = vst.msk [vmem:[#allocation2 + $0x210] sm:$0xff] %vm199_vm0, %v2546_v5 }
  0x3a   : > { %v851_v27 = vld [vmem:[#allocation2 + $0x127] sm:$0xff]  ;;  %v852_v28 = vld [vmem:[#allocation2 + $0x12f] sm:$0xff]  ;;  %433 = vst.msk [vmem:[#allocation3 + $0x10] sm:$0xff] %vm199_vm0, %v849_v24  ;;  %434 = vst.msk [vmem:[#allocation3 + $0x18] sm:$0xff] %vm199_vm0, %v850_v25 }
  0x3b   : > { %435 = vst.msk [vmem:[#allocation3 + $0x20] sm:$0xff] %vm199_vm0, %v851_v27  ;;  %436 = vst.msk [vmem:[#allocation3 + $0x28] sm:$0xff] %vm199_vm0, %v852_v28  ;;  %v2939_v29 = vld [vmem:[#allocation2 + $0x147] sm:$0xff]  ;;  %v2941_v30 = vld [vmem:[#allocation2 + $0x14f] sm:$0xff] }
  0x3c   : > { %533 = vrot.lane.b32.xlu1 %v466_v26, %s2715_s21  ;;  %437 = vst.msk [vmem:[#allocation3 + $0x30] sm:$0xff] %vm199_vm0, %v2939_v29  ;;  %438 = vst.msk [vmem:[#allocation3 + $0x38] sm:$0xff] %vm199_vm0, %v2941_v30  ;;  %v2948_v32 = vld [vmem:[#allocation2 + $0x167] sm:$0xff]  ;;  %v2950_v33 = vld [vmem:[#allocation2 + $0x16f] sm:$0xff] }
  0x3d   : > { %439 = vst.msk [vmem:[#allocation3 + $0x40] sm:$0xff] %vm199_vm0, %v2948_v32  ;;  %440 = vst.msk [vmem:[#allocation3 + $0x48] sm:$0xff] %vm199_vm0, %v2950_v33  ;;  %913 = vrot.lane.b32.xlu0 %v849_v24, %s2717_s23  ;;  %v2957_v34 = vld [vmem:[#allocation2 + $0x187] sm:$0xff]  ;;  %v2959_v35 = vld [vmem:[#allocation2 + $0x18f] sm:$0xff] }
  0x3e   : > { %441 = vst.msk [vmem:[#allocation3 + $0x50] sm:$0xff] %vm199_vm0, %v2957_v34  ;;  %442 = vst.msk [vmem:[#allocation3 + $0x58] sm:$0xff] %vm199_vm0, %v2959_v35  ;;  %v1044_v39 = vld [vmem:[#allocation2 + $0x128] sm:$0xff]  ;;  %v1045_v42 = vld [vmem:[#allocation2 + $0x130] sm:$0xff] }
  0x3f   : > { %v2974_v40 = vld [vmem:[#allocation2 + $0x1a7] sm:$0xff]  ;;  %v2976_v41 = vld [vmem:[#allocation2 + $0x1af] sm:$0xff]  ;;  %386 = vst.msk [vmem:[#allocation2 + $0x248] sm:$0xff] %vm199_vm0, %v2553_v53  ;;  %387 = vst.msk [vmem:[#allocation2 + $0x250] sm:$0xff] %vm199_vm0, %v2554_v54 }
  0x40   : > { %726 = vrot.lane.b32.xlu1 %v659_v31, %s2716_s22  ;;  %443 = vst.msk [vmem:[#allocation3 + $0x60] sm:$0xff] %vm199_vm0, %v2974_v40  ;;  %444 = vst.msk [vmem:[#allocation3 + $0x68] sm:$0xff] %vm199_vm0, %v2976_v41  ;;  %v1237_v43 = vld [vmem:[#allocation2 + $0x129] sm:$0xff]  ;;  %v1238_v44 = vld [vmem:[#allocation2 + $0x131] sm:$0xff] }
  0x41   : > { %917 = vrot.lane.b32.xlu0 %v851_v27, %s2717_s23  ;;  %v2996_v48 = vld [vmem:[#allocation2 + $0x1c7] sm:$0xff]  ;;  %v2998_v49 = vld [vmem:[#allocation2 + $0x1cf] sm:$0xff] }
  0x42   : > { %v1624_v50 = vld [vmem:[#allocation2 + $0x148] sm:$0xff]  ;;  %445 = vst.msk [vmem:[#allocation3 + $0x70] sm:$0xff] %vm199_vm0, %v2996_v48  ;;  %446 = vst.msk [vmem:[#allocation3 + $0x78] sm:$0xff] %vm199_vm0, %v2998_v49  ;;  %v1625_v52 = vld [vmem:[#allocation2 + $0x150] sm:$0xff] }
  0x43   : > { %v1817_v56 = vld [vmem:[#allocation2 + $0x149] sm:$0xff]  ;;  %v1818_v57 = vld [vmem:[#allocation2 + $0x151] sm:$0xff] }
  0x44   : > { %915 = vrot.lane.b32.xlu1 %v850_v25, %s2717_s23  ;;  %v3040_v61 = vld [vmem:[#allocation2 + $0x1e7] sm:$0xff]  ;;  %v3042_v62 = vld [vmem:[#allocation2 + $0x1ef] sm:$0xff] }
  0x45   : > { %1106 = vrot.lane.b32.xlu0 %v465_v22, %s2718_s24  ;;  %v1048_v63 = vld [vmem:[#allocation2 + $0x168] sm:$0xff]  ;;  %447 = vst.msk [vmem:[#allocation3 + $0x80] sm:$0xff] %vm199_vm0, %v3040_v61  ;;  %448 = vst.msk [vmem:[#allocation3 + $0x88] sm:$0xff] %vm199_vm0, %v3042_v62  ;;  %v1049_v0 = vld [vmem:[#allocation2 + $0x170] sm:$0xff] }
  0x46   : > { %v1241_v1 = vld [vmem:[#allocation2 + $0x169] sm:$0xff]  ;;  %v1242_v2 = vld [vmem:[#allocation2 + $0x171] sm:$0xff] }
  0x47   : > { %v3067_v6 = vld [vmem:[#allocation2 + $0x207] sm:$0xff]  ;;  %v3069_v7 = vld [vmem:[#allocation2 + $0x20f] sm:$0xff] }
  0x48   : > { %919 = vrot.lane.b32.xlu1 %v852_v28, %s2717_s23  ;;  %v3073_v8 = vld [vmem:[#allocation2 + $0x188] sm:$0xff]  ;;  %449 = vst.msk [vmem:[#allocation3 + $0x90] sm:$0xff] %vm199_vm0, %v3067_v6  ;;  %450 = vst.msk [vmem:[#allocation3 + $0x98] sm:$0xff] %vm199_vm0, %v3069_v7  ;;  %v3083_v12 = vld [vmem:[#allocation2 + $0x190] sm:$0xff] }
  0x49   : > { %1110 = vrot.lane.b32.xlu0 %v1044_v39, %s2718_s24  ;;  %v3094_v15 = vld [vmem:[#allocation2 + $0x189] sm:$0xff]  ;;  %v3101_v18 = vld [vmem:[#allocation2 + $0x191] sm:$0xff] }
  0x4a   : > { %v3144_v37 = vld [vmem:[#allocation2 + $0x1a8] sm:$0xff]  ;;  %v3172_v47 = vld [vmem:[#allocation2 + $0x1b1] sm:$0xff] }
  0x4b   : > { %v3193_v58 = vld [vmem:[#allocation2 + $0x247] sm:$0xff]  ;;  %v3195_v59 = vld [vmem:[#allocation2 + $0x24f] sm:$0xff] }
  0x4c   : > { %1108 = vrot.lane.b32.xlu1 %v466_v26, %s2718_s24  ;;  %v2583_v26 = vld [vmem:[%s2910_s20 + $0x48] sm:$0xff]   ;;  %453 = vst.msk [vmem:[#allocation3 + $0xb0] sm:$0xff] %vm199_vm0, %v3193_v58  ;;  %454 = vst.msk [vmem:[#allocation3 + $0xb8] sm:$0xff] %vm199_vm0, %v3195_v59 }
  0x4d   : > { %1299 = vrot.lane.b32.xlu0 %v658_v23, %s2719_s25  ;;  %v3199_v60 = vld [vmem:[#allocation2 + $0x1c8] sm:$0xff] }
  0x50   : > { %1112 = vrot.lane.b32.xlu1 %v1045_v42, %s2718_s24 }
  0x51   : > { %1303 = vrot.lane.b32.xlu0 %v1237_v43, %s2719_s25 }
  0x54   : > { %1301 = vrot.lane.b32.xlu1 %v659_v31, %s2719_s25 }
  0x55   : > { %1493 = vrot.lane.b32.xlu0 %v851_v27, %s2720_s26 }
  0x58   : > { %1305 = vrot.lane.b32.xlu1 %v1238_v44, %s2719_s25 }
  0x59   : > { %1497 = vrot.lane.b32.xlu0 %v2939_v29, %s2720_s26 }
  0x5c   : > { %1495 = vrot.lane.b32.xlu1 %v852_v28, %s2720_s26  ;;  %v2549_v28 = vunpack.c.l.bf16 %v2583_v26 }
  0x5d   : > { %1686 = vrot.lane.b32.xlu0 %v1044_v39, %s2721_s27 }
  0x5e   : > { %384 = vst.msk [vmem:[#allocation2 + $0x228] sm:$0xff] %vm199_vm0, %v2549_v28 }
  0x60   : > { %1499 = vrot.lane.b32.xlu1 %v2941_v30, %s2720_s26 }
  0x61   : > { %1690 = vrot.lane.b32.xlu0 %v1624_v50, %s2721_s27 }
  0x64   : > { %1688 = vrot.lane.b32.xlu1 %v1045_v42, %s2721_s27 }
  0x65   : > { %1879 = vrot.lane.b32.xlu0 %v1237_v43, %s2722_s30 }
  0x68   : > { %1692 = vrot.lane.b32.xlu1 %v1625_v52, %s2721_s27 }
  0x69   : > { %535 = vrot.lane.b32.xlu0 %v1044_v39, %s2715_s21  ;;  %v3156_v39 = vld [vmem:[#allocation2 + $0x1b0] sm:$0xff] }
  0x6c   : > { %1881 = vrot.lane.b32.xlu1 %v1238_v44, %s2722_s30 }
  0x6d   : > { %1883 = vrot.lane.b32.xlu0 %v1817_v56, %s2722_s30 }
  0x70   : > { %537 = vrot.lane.b32.xlu1 %v1045_v42, %s2715_s21 }
  0x71   : > { %539 = vrot.lane.b32.xlu0 %v1624_v50, %s2715_s21 }
  0x74   : > { %1885 = vrot.lane.b32.xlu1 %v1818_v57, %s2722_s30 }
  0x75   : > { %728 = vrot.lane.b32.xlu0 %v1237_v43, %s2716_s22 }
  0x78   : > { %541 = vrot.lane.b32.xlu1 %v1625_v52, %s2715_s21 }
  0x79   : > { %732 = vrot.lane.b32.xlu0 %v1817_v56, %s2716_s22 }
  0x7c   : > { %730 = vrot.lane.b32.xlu1 %v1238_v44, %s2716_s22  ;;  %v3164_v44 = vld [vmem:[#allocation2 + $0x1a9] sm:$0xff] }
  0x7d   : > { %921 = vrot.lane.b32.xlu0 %v2939_v29, %s2717_s23  ;;  %v2550_v29 = vunpack.c.h.bf16 %v2583_v26 }
  0x7f   : > { %385 = vst.msk [vmem:[#allocation2 + $0x230] sm:$0xff] %vm199_vm0, %v2550_v29 }
  0x80   : > { %734 = vrot.lane.b32.xlu1 %v1818_v57, %s2716_s22 }
  0x81   : > { %925 = vrot.lane.b32.xlu0 %v2948_v32, %s2717_s23 }
  0x84   : > { %923 = vrot.lane.b32.xlu1 %v2941_v30, %s2717_s23 }
  0x85   : > { %1114 = vrot.lane.b32.xlu0 %v1624_v50, %s2718_s24 }
  0x86   : > { %v528_v9 = vpop.permute.xlu0 %527  ;;  %v3140_v36 = vld [vmem:[#allocation2 + $0x22f] sm:$0xff] }
  0x87   : > { %624 = vst.msk [vmem:[#allocation3] sm:$0xff] %vm623_vm3, %v528_v9 }
  0x88   : > { %927 = vrot.lane.b32.xlu1 %v2950_v33, %s2717_s23  ;;  %452 = vst.msk [vmem:[#allocation3 + $0xa8] sm:$0xff] %vm199_vm0, %v3140_v36 }
  0x89   : > { %1118 = vrot.lane.b32.xlu0 %v1048_v63, %s2718_s24 }
  0x8a   : > { %v530_v11 = vpop.permute.xlu0 %529 }
  0x8b   : > { %625 = vst.msk [vmem:[#allocation3 + $0x8] sm:$0xff] %vm623_vm3, %v530_v11  ;;  %v3226_v11 = vld [vmem:[#allocation2 + $0x1c9] sm:$0xff] }
  0x8c   : > { %1116 = vrot.lane.b32.xlu1 %v1625_v52, %s2718_s24 }
  0x8d   : > { %1307 = vrot.lane.b32.xlu0 %v1817_v56, %s2719_s25 }
  0x8e   : > { %v721_v13 = vpop.permute.xlu0 %720 }
  0x8f   : > { %817 = vst.msk [vmem:[#allocation3] sm:$0xff] %vm816_vm4, %v721_v13 }
  0x90   : > { %1120 = vrot.lane.b32.xlu1 %v1049_v0, %s2718_s24 }
  0x91   : > { %1311 = vrot.lane.b32.xlu0 %v1241_v1, %s2719_s25 }
  0x94   : > { %1309 = vrot.lane.b32.xlu1 %v1818_v57, %s2719_s25 }
  0x95   : > { %1501 = vrot.lane.b32.xlu0 %v2948_v32, %s2720_s26 }
  0x98   : > { %1313 = vrot.lane.b32.xlu1 %v1242_v2, %s2719_s25 }
  0x99   : > { %1505 = vrot.lane.b32.xlu0 %v2957_v34, %s2720_s26 }
  0x9c   : > { %1503 = vrot.lane.b32.xlu1 %v2950_v33, %s2720_s26 }
  0x9d   : > { %1694 = vrot.lane.b32.xlu0 %v1048_v63, %s2721_s27 }
  0xa0   : > { %1507 = vrot.lane.b32.xlu1 %v2959_v35, %s2720_s26 }
  0xa1   : > { %1698 = vrot.lane.b32.xlu0 %v3073_v8, %s2721_s27  ;;  %v723_v10 = vpop.permute.xlu1 %722 }
  0xa2   : > { %818 = vst.msk [vmem:[#allocation3 + $0x8] sm:$0xff] %vm816_vm4, %v723_v10 }
  0xa4   : > { %1696 = vrot.lane.b32.xlu1 %v1049_v0, %s2721_s27 }
  0xa5   : > { %1887 = vrot.lane.b32.xlu0 %v1241_v1, %s2722_s30 }
  0xa8   : > { %1700 = vrot.lane.b32.xlu1 %v3083_v12, %s2721_s27 }
  0xa9   : > { %543 = vrot.lane.b32.xlu0 %v1048_v63, %s2715_s21 }
  0xaa   : > { %v532_v14 = vpop.permute.xlu1 %531 }
  0xab   : > { %626 = vst.msk [vmem:[#allocation3 + $0x10] sm:$0xff] %vm623_vm3, %v532_v14  ;;  %v725_v16 = vpop.permute.xlu0 %724 }
  0xac   : > { %1889 = vrot.lane.b32.xlu1 %v1242_v2, %s2722_s30  ;;  %819 = vst.msk [vmem:[#allocation3 + $0x10] sm:$0xff] %vm816_vm4, %v725_v16  ;;  %v3235_v16 = vld [vmem:[#allocation2 + $0x1d1] sm:$0xff] }
  0xad   : > { %1891 = vrot.lane.b32.xlu0 %v3094_v15, %s2722_s30 }
  0xae   : > { %v534_v17 = vpop.permute.xlu1 %533 }
  0xaf   : > { %627 = vst.msk [vmem:[#allocation3 + $0x18] sm:$0xff] %vm623_vm3, %v534_v17  ;;  %v914_v19 = vpop.permute.xlu0 %913 }
  0xb0   : > { %545 = vrot.lane.b32.xlu1 %v1049_v0, %s2715_s21  ;;  %1010 = vst.msk [vmem:[#allocation3] sm:$0xff] %vm1009_vm5, %v914_v19 }
  0xb1   : > { %547 = vrot.lane.b32.xlu0 %v3073_v8, %s2715_s21 }
  0xb2   : > { %v727_v20 = vpop.permute.xlu1 %726 }
  0xb3   : > { %820 = vst.msk [vmem:[#allocation3 + $0x18] sm:$0xff] %vm816_vm4, %v727_v20  ;;  %v918_v21 = vpop.permute.xlu0 %917 }
  0xb4   : > { %1893 = vrot.lane.b32.xlu1 %v3101_v18, %s2722_s30  ;;  %1012 = vst.msk [vmem:[#allocation3 + $0x10] sm:$0xff] %vm1009_vm5, %v918_v21 }
  0xb5   : > { %736 = vrot.lane.b32.xlu0 %v1241_v1, %s2716_s22  ;;  %v3211_v1 = vld [vmem:[#allocation2 + $0x1d0] sm:$0xff] }
  0xb6   : > { %v916_v22 = vpop.permute.xlu1 %915 }
  0xb7   : > { %1011 = vst.msk [vmem:[#allocation3 + $0x8] sm:$0xff] %vm1009_vm5, %v916_v22  ;;  %v1107_v23 = vpop.permute.xlu0 %1106 }
  0xb8   : > { %549 = vrot.lane.b32.xlu1 %v3083_v12, %s2715_s21  ;;  %1203 = vst.msk [vmem:[#allocation3] sm:$0xff] %vm1202_vm6, %v1107_v23 }
  0xb9   : > { %740 = vrot.lane.b32.xlu0 %v3094_v15, %s2716_s22 }
  0xba   : > { %v920_v24 = vpop.permute.xlu1 %919 }
  0xbb   : > { %1013 = vst.msk [vmem:[#allocation3 + $0x18] sm:$0xff] %vm1009_vm5, %v920_v24  ;;  %v1111_v25 = vpop.permute.xlu0 %1110  ;;  %v2585_v24 = vld [vmem:[%s2910_s20 + $0x58] sm:$0xff]  }
  0xbc   : > { %738 = vrot.lane.b32.xlu1 %v1242_v2, %s2716_s22  ;;  %1205 = vst.msk [vmem:[#allocation3 + $0x10] sm:$0xff] %vm1202_vm6, %v1111_v25  ;;  %v2557_v26 = vunpack.c.l.bf16 %v2585_v24 }
  0xbd   : > { %929 = vrot.lane.b32.xlu0 %v2957_v34, %s2717_s23  ;;  %v3138_v34 = vld [vmem:[#allocation2 + $0x227] sm:$0xff] }
  0xbe   : > { %v1109_v27 = vpop.permute.xlu1 %1108  ;;  %451 = vst.msk [vmem:[#allocation3 + $0xa0] sm:$0xff] %vm199_vm0, %v3138_v34  ;;  %388 = vst.msk [vmem:[#allocation2 + $0x268] sm:$0xff] %vm199_vm0, %v2557_v26 }
  0xbf   : > { %1204 = vst.msk [vmem:[#allocation3 + $0x8] sm:$0xff] %vm1202_vm6, %v1109_v27  ;;  %v1300_v30 = vpop.permute.xlu0 %1299  ;;  %v2558_v27 = vunpack.c.h.bf16 %v2585_v24 }
  0xc0   : > { %742 = vrot.lane.b32.xlu1 %v3101_v18, %s2716_s22  ;;  %1396 = vst.msk [vmem:[#allocation3] sm:$0xff] %vm1395_vm7, %v1300_v30 }
  0xc1   : > { %933 = vrot.lane.b32.xlu0 %v2974_v40, %s2717_s23  ;;  %389 = vst.msk [vmem:[#allocation2 + $0x270] sm:$0xff] %vm199_vm0, %v2558_v27 }
  0xc2   : > { %v1113_v31 = vpop.permute.xlu1 %1112 }
  0xc3   : > { %1206 = vst.msk [vmem:[#allocation3 + $0x18] sm:$0xff] %vm1202_vm6, %v1113_v31  ;;  %v1304_v32 = vpop.permute.xlu0 %1303 }
  0xc4   : > { %931 = vrot.lane.b32.xlu1 %v2959_v35, %s2717_s23  ;;  %1398 = vst.msk [vmem:[#allocation3 + $0x10] sm:$0xff] %vm1395_vm7, %v1304_v32 }
  0xc5   : > { %1122 = vrot.lane.b32.xlu0 %v3073_v8, %s2718_s24  ;;  %v3274_v31 = vld [vmem:[#allocation2 + $0x267] sm:$0xff] }
  0xc6   : > { %v1302_v33 = vpop.permute.xlu1 %1301  ;;  %455 = vst.msk [vmem:[#allocation3 + $0xc0] sm:$0xff] %vm199_vm0, %v3274_v31 }
  0xc7   : > { %1397 = vst.msk [vmem:[#allocation3 + $0x8] sm:$0xff] %vm1395_vm7, %v1302_v33  ;;  %v1494_v35 = vpop.permute.xlu0 %1493  ;;  %v3280_v33 = vld [vmem:[#allocation2 + $0x1e8] sm:$0xff] }
  0xc8   : > { %935 = vrot.lane.b32.xlu1 %v2976_v41, %s2717_s23  ;;  %1590 = vst.msk [vmem:[#allocation3] sm:$0xff] %vm1589_vm8, %v1494_v35  ;;  %v3276_v32 = vld [vmem:[#allocation2 + $0x26f] sm:$0xff] }
  0xc9   : > { %1126 = vrot.lane.b32.xlu0 %v3144_v37, %s2718_s24  ;;  %456 = vst.msk [vmem:[#allocation3 + $0xc8] sm:$0xff] %vm199_vm0, %v3276_v32  ;;  %v3292_v35 = vld [vmem:[#allocation2 + $0x1f0] sm:$0xff] }
  0xca   : > { %v1306_v38 = vpop.permute.xlu1 %1305 }
  0xcb   : > { %1399 = vst.msk [vmem:[#allocation3 + $0x18] sm:$0xff] %vm1395_vm7, %v1306_v38  ;;  %v1498_v42 = vpop.permute.xlu0 %1497 }
  0xcc   : > { %1124 = vrot.lane.b32.xlu1 %v3083_v12, %s2718_s24  ;;  %1592 = vst.msk [vmem:[#allocation3 + $0x10] sm:$0xff] %vm1589_vm8, %v1498_v42  ;;  %v3300_v42 = vld [vmem:[#allocation2 + $0x1e9] sm:$0xff] }
  0xcd   : > { %1315 = vrot.lane.b32.xlu0 %v3094_v15, %s2719_s25 }
  0xce   : > { %v1496_v43 = vpop.permute.xlu1 %1495 }
  0xcf   : > { %1591 = vst.msk [vmem:[#allocation3 + $0x8] sm:$0xff] %vm1589_vm8, %v1496_v43  ;;  %v1687_v45 = vpop.permute.xlu0 %1686 }
  0xd0   : > { %1128 = vrot.lane.b32.xlu1 %v3156_v39, %s2718_s24  ;;  %1783 = vst.msk [vmem:[#allocation3] sm:$0xff] %vm1782_vm9, %v1687_v45  ;;  %v3308_v45 = vld [vmem:[#allocation2 + $0x1f1] sm:$0xff] }
  0xd1   : > { %1319 = vrot.lane.b32.xlu0 %v3164_v44, %s2719_s25 }
  0xd2   : > { %v1500_v46 = vpop.permute.xlu1 %1499 }
  0xd3   : > { %1593 = vst.msk [vmem:[#allocation3 + $0x18] sm:$0xff] %vm1589_vm8, %v1500_v46  ;;  %v1691_v50 = vpop.permute.xlu0 %1690 }
  0xd4   : > { %1317 = vrot.lane.b32.xlu1 %v3101_v18, %s2719_s25  ;;  %1785 = vst.msk [vmem:[#allocation3 + $0x10] sm:$0xff] %vm1782_vm9, %v1691_v50 }
  0xd5   : > { %1509 = vrot.lane.b32.xlu0 %v2974_v40, %s2720_s26 }
  0xd6   : > { %v1689_v52 = vpop.permute.xlu1 %1688 }
  0xd7   : > { %1784 = vst.msk [vmem:[#allocation3 + $0x8] sm:$0xff] %vm1782_vm9, %v1689_v52  ;;  %v1880_v55 = vpop.permute.xlu0 %1879 }
  0xd8   : > { %1321 = vrot.lane.b32.xlu1 %v3172_v47, %s2719_s25  ;;  %1976 = vst.msk [vmem:[#allocation3] sm:$0xff] %vm1975_vm10, %v1880_v55 }
  0xd9   : > { %1513 = vrot.lane.b32.xlu0 %v2996_v48, %s2720_s26 }
  0xda   : > { %v1693_v56 = vpop.permute.xlu1 %1692 }
  0xdb   : > { %1786 = vst.msk [vmem:[#allocation3 + $0x18] sm:$0xff] %vm1782_vm9, %v1693_v56  ;;  %v536_v40 = vpop.permute.xlu0 %535 }
  0xdc   : > { %1511 = vrot.lane.b32.xlu1 %v2976_v41, %s2720_s26  ;;  %628 = vst.msk [vmem:[#allocation3 + $0x20] sm:$0xff] %vm623_vm3, %v536_v40 }
  0xdd   : > { %1702 = vrot.lane.b32.xlu0 %v3144_v37, %s2721_s27 }
  0xde   : > { %v1882_v57 = vpop.permute.xlu1 %1881 }
  0xdf   : > { %1977 = vst.msk [vmem:[#allocation3 + $0x8] sm:$0xff] %vm1975_vm10, %v1882_v57  ;;  %v1884_v41 = vpop.permute.xlu0 %1883  ;;  %v2008_v0 = vld [vmem:[#allocation3] sm:$0xff]  ;;  %v3335_v57 = vld [vmem:[#allocation2 + $0x208] sm:$0xff] }
  0xe0   : > { %1515 = vrot.lane.b32.xlu1 %v2998_v49, %s2720_s26  ;;  %1978 = vst.msk [vmem:[#allocation3 + $0x10] sm:$0xff] %vm1975_vm10, %v1884_v41 }
  0xe1   : > { %1706 = vrot.lane.b32.xlu0 %v3199_v60, %s2721_s27 }
  0xe2   : > { %v538_v63 = vpop.permute.xlu1 %537 }
  0xe3   : > { %629 = vst.msk [vmem:[#allocation3 + $0x28] sm:$0xff] %vm623_vm3, %v538_v63  ;;  %v540_v2 = vpop.permute.xlu0 %539  ;;  %v3347_v63 = vld [vmem:[#allocation2 + $0x210] sm:$0xff] }
  0xe4   : > { %1704 = vrot.lane.b32.xlu1 %v3156_v39, %s2721_s27  ;;  %630 = vst.msk [vmem:[#allocation3 + $0x30] sm:$0xff] %vm623_vm3, %v540_v2 }
  0xe5   : > { %1895 = vrot.lane.b32.xlu0 %v3164_v44, %s2722_s30 }
  0xe6   : > { %v1886_v3 = vpop.permute.xlu1 %1885  ;;  %v2009_v4 = vld [vmem:[#allocation3 + $0x8] sm:$0xff] }
  0xe7   : > { %1979 = vst.msk [vmem:[#allocation3 + $0x18] sm:$0xff] %vm1975_vm10, %v1886_v3  ;;  %v2040_v5 = vpack.c.bf16 %v2009_v4, %v2008_v0  ;;  %v729_v8 = vpop.permute.xlu0 %728  ;;  %v2010_v10 = vld [vmem:[#allocation3 + $0x10] sm:$0xff] }
  0xe8   : > { %1708 = vrot.lane.b32.xlu1 %v3211_v1, %s2721_s27  ;;  %821 = vst.msk [vmem:[#allocation3 + $0x20] sm:$0xff] %vm816_vm4, %v729_v8 }
  0xe9   : > { %2653 = vmatprep.mubr.msk.bf16.mxu0 %vm2083_vm11, %v2040_v5  ;;  %551 = vrot.lane.b32.xlu0 %v3144_v37, %s2715_s21 }
  0xea   : > { %v542_v9 = vpop.permute.xlu1 %541 }
  0xeb   : > { %631 = vst.msk [vmem:[#allocation3 + $0x38] sm:$0xff] %vm623_vm3, %v542_v9  ;;  %v733_v12 = vpop.permute.xlu0 %732  ;;  %v3362_v9 = vld [vmem:[#allocation2 + $0x209] sm:$0xff] }
  0xec   : > { %1897 = vrot.lane.b32.xlu1 %v3172_v47, %s2722_s30  ;;  %823 = vst.msk [vmem:[#allocation3 + $0x30] sm:$0xff] %vm816_vm4, %v733_v12 }
  0xed   : > { %1899 = vrot.lane.b32.xlu0 %v3226_v11, %s2722_s30 }
  0xee   : > { %v731_v13 = vpop.permute.xlu1 %730  ;;  %v2011_v14 = vld [vmem:[#allocation3 + $0x18] sm:$0xff] }
  0xef   : > { %822 = vst.msk [vmem:[#allocation3 + $0x28] sm:$0xff] %vm816_vm4, %v731_v13  ;;  %v2041_v15 = vpack.c.bf16 %v2011_v14, %v2010_v10  ;;  %v922_v17 = vpop.permute.xlu0 %921  ;;  %v3371_v14 = vld [vmem:[#allocation2 + $0x211] sm:$0xff] }
  0xf0   : > { %553 = vrot.lane.b32.xlu1 %v3156_v39, %s2715_s21  ;;  %1014 = vst.msk [vmem:[#allocation3 + $0x20] sm:$0xff] %vm1009_vm5, %v922_v17 }
  0xf1   : > { %2654 = vmatmul.mubr.msk.bf16.vlgmr.msra.gmra.mxu0 %vm2083_vm11, %v2041_v15  ;;  %555 = vrot.lane.b32.xlu0 %v3199_v60, %s2715_s21 }
  0xf2   : > { %v735_v18 = vpop.permute.xlu1 %734 }
  0xf3   : > { %824 = vst.msk [vmem:[#allocation3 + $0x38] sm:$0xff] %vm816_vm4, %v735_v18  ;;  %v926_v19 = vpop.permute.xlu0 %925 }
  0xf4   : > { %1901 = vrot.lane.b32.xlu1 %v3235_v16, %s2722_s30  ;;  %1016 = vst.msk [vmem:[#allocation3 + $0x30] sm:$0xff] %vm1009_vm5, %v926_v19 }
  0xf5   : > { %744 = vrot.lane.b32.xlu0 %v3164_v44, %s2716_s22 }
  0xf6   : > { %v924_v20 = vpop.permute.xlu1 %923 }
  0xf7   : > { %1015 = vst.msk [vmem:[#allocation3 + $0x28] sm:$0xff] %vm1009_vm5, %v924_v20  ;;  %v1115_v21 = vpop.permute.xlu0 %1114 }
  0xf8   : > { %557 = vrot.lane.b32.xlu1 %v3211_v1, %s2715_s21  ;;  %1207 = vst.msk [vmem:[#allocation3 + $0x20] sm:$0xff] %vm1202_vm6, %v1115_v21 }
  0xf9   : > { %748 = vrot.lane.b32.xlu0 %v3226_v11, %s2716_s22 }
  0xfa   : > { %v928_v22 = vpop.permute.xlu1 %927 }
  0xfb   : > { %1017 = vst.msk [vmem:[#allocation3 + $0x38] sm:$0xff] %vm1009_vm5, %v928_v22  ;;  %v1119_v23 = vpop.permute.xlu0 %1118  ;;  %v2587_v22 = vld [vmem:[%s2910_s20 + $0x68] sm:$0xff]  }
  0xfc   : > { %746 = vrot.lane.b32.xlu1 %v3172_v47, %s2716_s22  ;;  %1209 = vst.msk [vmem:[#allocation3 + $0x30] sm:$0xff] %vm1202_vm6, %v1119_v23  ;;  %v2586_v47 = vld [vmem:[%s2910_s20 + $0x60] sm:$0xff]   ;;  %v2565_v24 = vunpack.c.l.bf16 %v2587_v22 }
  0xfd   : > { %937 = vrot.lane.b32.xlu0 %v2996_v48, %s2717_s23  ;;  %v2561_v51 = vunpack.c.l.bf16 %v2586_v47  ;;  %v2562_v52 = vunpack.c.h.bf16 %v2586_v47 }
  0xfe   : > { %v1117_v25 = vpop.permute.xlu1 %1116  ;;  %392 = vst.msk [vmem:[#allocation2 + $0x2a8] sm:$0xff] %vm199_vm0, %v2565_v24 }
  0xff   : > { %1208 = vst.msk [vmem:[#allocation3 + $0x28] sm:$0xff] %vm1202_vm6, %v1117_v25  ;;  %v1308_v28 = vpop.permute.xlu0 %1307  ;;  %v2566_v25 = vunpack.c.h.bf16 %v2587_v22 }
 0x100   : > { %750 = vrot.lane.b32.xlu1 %v3235_v16, %s2716_s22  ;;  %1400 = vst.msk [vmem:[#allocation3 + $0x20] sm:$0xff] %vm1395_vm7, %v1308_v28 }
 0x101   : > { %941 = vrot.lane.b32.xlu0 %v3040_v61, %s2717_s23  ;;  %390 = vst.msk [vmem:[#allocation2 + $0x288] sm:$0xff] %vm199_vm0, %v2561_v51  ;;  %391 = vst.msk [vmem:[#allocation2 + $0x290] sm:$0xff] %vm199_vm0, %v2562_v52 }
 0x102   : > { %v1121_v29 = vpop.permute.xlu1 %1120  ;;  %393 = vst.msk [vmem:[#allocation2 + $0x2b0] sm:$0xff] %vm199_vm0, %v2566_v25 }
 0x103   : > { %1210 = vst.msk [vmem:[#allocation3 + $0x38] sm:$0xff] %vm1202_vm6, %v1121_v29  ;;  %v1312_v48 = vpop.permute.xlu0 %1311 }
 0x104   : > { %939 = vrot.lane.b32.xlu1 %v2998_v49, %s2717_s23  ;;  %1402 = vst.msk [vmem:[#allocation3 + $0x30] sm:$0xff] %vm1395_vm7, %v1312_v48 }
 0x105   : > { %1130 = vrot.lane.b32.xlu0 %v3199_v60, %s2718_s24  ;;  %v3410_v29 = vld [vmem:[#allocation2 + $0x2a7] sm:$0xff] }
 0x106   : > { %v1310_v30 = vpop.permute.xlu1 %1309  ;;  %459 = vst.msk [vmem:[#allocation3 + $0xe0] sm:$0xff] %vm199_vm0, %v3410_v29 }
 0x107   : > { %1401 = vst.msk [vmem:[#allocation3 + $0x28] sm:$0xff] %vm1395_vm7, %v1310_v30  ;;  %v1502_v49 = vpop.permute.xlu0 %1501  ;;  %v3416_v30 = vld [vmem:[#allocation2 + $0x228] sm:$0xff] }
 0x108   : > { %943 = vrot.lane.b32.xlu1 %v3042_v62, %s2717_s23  ;;  %1594 = vst.msk [vmem:[#allocation3 + $0x20] sm:$0xff] %vm1589_vm8, %v1502_v49  ;;  %v3329_v56 = vld [vmem:[#allocation2 + $0x287] sm:$0xff]  ;;  %v3331_v40 = vld [vmem:[#allocation2 + $0x28f] sm:$0xff] }
 0x109   : > { %1134 = vrot.lane.b32.xlu0 %v3280_v33, %s2718_s24  ;;  %457 = vst.msk [vmem:[#allocation3 + $0xd0] sm:$0xff] %vm199_vm0, %v3329_v56  ;;  %458 = vst.msk [vmem:[#allocation3 + $0xd8] sm:$0xff] %vm199_vm0, %v3331_v40  ;;  %v3412_v48 = vld [vmem:[#allocation2 + $0x2af] sm:$0xff] }
 0x10a   : > { %v1314_v37 = vpop.permute.xlu1 %1313  ;;  %460 = vst.msk [vmem:[#allocation3 + $0xe8] sm:$0xff] %vm199_vm0, %v3412_v48  ;;  %v3428_v49 = vld [vmem:[#allocation2 + $0x230] sm:$0xff] }
 0x10b   : > { %1403 = vst.msk [vmem:[#allocation3 + $0x38] sm:$0xff] %vm1395_vm7, %v1314_v37  ;;  %v1506_v38 = vpop.permute.xlu0 %1505 }
 0x10c   : > { %1132 = vrot.lane.b32.xlu1 %v3211_v1, %s2718_s24  ;;  %1596 = vst.msk [vmem:[#allocation3 + $0x30] sm:$0xff] %vm1589_vm8, %v1506_v38  ;;  %v3436_v38 = vld [vmem:[#allocation2 + $0x229] sm:$0xff] }
 0x10d   : > { %1323 = vrot.lane.b32.xlu0 %v3226_v11, %s2719_s25 }
 0x10e   : > { %v1504_v39 = vpop.permute.xlu1 %1503 }
 0x10f   : > { %1595 = vst.msk [vmem:[#allocation3 + $0x28] sm:$0xff] %vm1589_vm8, %v1504_v39  ;;  %v1695_v43 = vpop.permute.xlu0 %1694 }
 0x110   : > { %1136 = vrot.lane.b32.xlu1 %v3292_v35, %s2718_s24  ;;  %1787 = vst.msk [vmem:[#allocation3 + $0x20] sm:$0xff] %vm1782_vm9, %v1695_v43  ;;  %v3444_v43 = vld [vmem:[#allocation2 + $0x231] sm:$0xff] }
 0x111   : > { %1327 = vrot.lane.b32.xlu0 %v3300_v42, %s2719_s25 }
 0x112   : > { %v1508_v44 = vpop.permute.xlu1 %1507 }
 0x113   : > { %1597 = vst.msk [vmem:[#allocation3 + $0x38] sm:$0xff] %vm1589_vm8, %v1508_v44  ;;  %v1699_v46 = vpop.permute.xlu0 %1698 }
 0x114   : > { %1325 = vrot.lane.b32.xlu1 %v3235_v16, %s2719_s25  ;;  %1789 = vst.msk [vmem:[#allocation3 + $0x30] sm:$0xff] %vm1782_vm9, %v1699_v46 }
 0x115   : > { %1517 = vrot.lane.b32.xlu0 %v3040_v61, %s2720_s26 }
 0x116   : > { %v1697_v50 = vpop.permute.xlu1 %1696 }
 0x117   : > { %1788 = vst.msk [vmem:[#allocation3 + $0x28] sm:$0xff] %vm1782_vm9, %v1697_v50  ;;  %v1888_v53 = vpop.permute.xlu0 %1887 }
 0x118   : > { %1329 = vrot.lane.b32.xlu1 %v3308_v45, %s2719_s25  ;;  %1980 = vst.msk [vmem:[#allocation3 + $0x20] sm:$0xff] %vm1975_vm10, %v1888_v53 }
 0x119   : > { %1521 = vrot.lane.b32.xlu0 %v3067_v6, %s2720_s26 }
 0x11a   : > { %v1701_v54 = vpop.permute.xlu1 %1700 }
 0x11b   : > { %1790 = vst.msk [vmem:[#allocation3 + $0x38] sm:$0xff] %vm1782_vm9, %v1701_v54  ;;  %v544_v61 = vpop.permute.xlu0 %543 }
 0x11c   : > { %1519 = vrot.lane.b32.xlu1 %v3042_v62, %s2720_s26  ;;  %632 = vst.msk [vmem:[#allocation3 + $0x40] sm:$0xff] %vm623_vm3, %v544_v61 }
 0x11d   : > { %1710 = vrot.lane.b32.xlu0 %v3280_v33, %s2721_s27 }
 0x11e   : > { %v1890_v55 = vpop.permute.xlu1 %1889 }
 0x11f   : > { %1981 = vst.msk [vmem:[#allocation3 + $0x28] sm:$0xff] %vm1975_vm10, %v1890_v55  ;;  %v1892_v62 = vpop.permute.xlu0 %1891  ;;  %v2012_v41 = vld [vmem:[#allocation3 + $0x20] sm:$0xff]  ;;  %v3471_v55 = vld [vmem:[#allocation2 + $0x248] sm:$0xff] }
 0x120   : > { %1523 = vrot.lane.b32.xlu1 %v3069_v7, %s2720_s26  ;;  %1982 = vst.msk [vmem:[#allocation3 + $0x30] sm:$0xff] %vm1975_vm10, %v1892_v62 }
 0x121   : > { %1714 = vrot.lane.b32.xlu0 %v3335_v57, %s2721_s27 }
 0x122   : > { %v546_v60 = vpop.permute.xlu1 %545 }
 0x123   : > { %633 = vst.msk [vmem:[#allocation3 + $0x48] sm:$0xff] %vm623_vm3, %v546_v60  ;;  %v548_v0 = vpop.permute.xlu0 %547  ;;  %v3483_v60 = vld [vmem:[#allocation2 + $0x250] sm:$0xff] }
 0x124   : > { %1712 = vrot.lane.b32.xlu1 %v3292_v35, %s2721_s27  ;;  %634 = vst.msk [vmem:[#allocation3 + $0x50] sm:$0xff] %vm623_vm3, %v548_v0 }
 0x125   : > { %1903 = vrot.lane.b32.xlu0 %v3300_v42, %s2722_s30 }
 0x126   : > { %v1894_v1 = vpop.permute.xlu1 %1893  ;;  %v2013_v2 = vld [vmem:[#allocation3 + $0x28] sm:$0xff] }
 0x127   : > { %1983 = vst.msk [vmem:[#allocation3 + $0x38] sm:$0xff] %vm1975_vm10, %v1894_v1  ;;  %v2042_v3 = vpack.c.bf16 %v2013_v2, %v2012_v41  ;;  %v737_v4 = vpop.permute.xlu0 %736  ;;  %v2014_v8 = vld [vmem:[#allocation3 + $0x30] sm:$0xff] }
 0x128   : > { %1716 = vrot.lane.b32.xlu1 %v3347_v63, %s2721_s27  ;;  %825 = vst.msk [vmem:[#allocation3 + $0x40] sm:$0xff] %vm816_vm4, %v737_v4 }
 0x129   : > { %2657 = vmatprep.mubr.msk.bf16.mxu0 %vm2083_vm11, %v2042_v3  ;;  %559 = vrot.lane.b32.xlu0 %v3280_v33, %s2715_s21 }
 0x12a   : > { %v550_v5 = vpop.permute.xlu1 %549 }
 0x12b   : > { %635 = vst.msk [vmem:[#allocation3 + $0x58] sm:$0xff] %vm623_vm3, %v550_v5  ;;  %v741_v10 = vpop.permute.xlu0 %740  ;;  %v3498_v5 = vld [vmem:[#allocation2 + $0x249] sm:$0xff] }
 0x12c   : > { %1905 = vrot.lane.b32.xlu1 %v3308_v45, %s2722_s30  ;;  %827 = vst.msk [vmem:[#allocation3 + $0x50] sm:$0xff] %vm816_vm4, %v741_v10 }
 0x12d   : > { %1907 = vrot.lane.b32.xlu0 %v3362_v9, %s2722_s30 }
 0x12e   : > { %v739_v11 = vpop.permute.xlu1 %738  ;;  %v2015_v12 = vld [vmem:[#allocation3 + $0x38] sm:$0xff] }
 0x12f   : > { %826 = vst.msk [vmem:[#allocation3 + $0x48] sm:$0xff] %vm816_vm4, %v739_v11  ;;  %v2043_v13 = vpack.c.bf16 %v2015_v12, %v2014_v8  ;;  %v930_v15 = vpop.permute.xlu0 %929  ;;  %v1834_v12 = vld [vmem:[#allocation2 + $0x251] sm:$0xff] }
 0x130   : > { %561 = vrot.lane.b32.xlu1 %v3292_v35, %s2715_s21  ;;  %1018 = vst.msk [vmem:[#allocation3 + $0x40] sm:$0xff] %vm1009_vm5, %v930_v15 }
 0x131   : > { %2658 = vmatmul.mubr.msk.bf16.gmra.mxu0 %vm2083_vm11, %v2043_v13  ;;  %563 = vrot.lane.b32.xlu0 %v3335_v57, %s2715_s21 }
 0x132   : > { %v743_v16 = vpop.permute.xlu1 %742 }
 0x133   : > { %828 = vst.msk [vmem:[#allocation3 + $0x58] sm:$0xff] %vm816_vm4, %v743_v16  ;;  %v934_v17 = vpop.permute.xlu0 %933 }
 0x134   : > { %1909 = vrot.lane.b32.xlu1 %v3371_v14, %s2722_s30  ;;  %1020 = vst.msk [vmem:[#allocation3 + $0x50] sm:$0xff] %vm1009_vm5, %v934_v17 }
 0x135   : > { %752 = vrot.lane.b32.xlu0 %v3300_v42, %s2716_s22 }
 0x136   : > { %v932_v18 = vpop.permute.xlu1 %931 }
 0x137   : > { %1019 = vst.msk [vmem:[#allocation3 + $0x48] sm:$0xff] %vm1009_vm5, %v932_v18  ;;  %v1123_v19 = vpop.permute.xlu0 %1122 }
 0x138   : > { %565 = vrot.lane.b32.xlu1 %v3347_v63, %s2715_s21  ;;  %1211 = vst.msk [vmem:[#allocation3 + $0x40] sm:$0xff] %vm1202_vm6, %v1123_v19 }
 0x139   : > { %756 = vrot.lane.b32.xlu0 %v3362_v9, %s2716_s22 }
 0x13a   : > { %v936_v20 = vpop.permute.xlu1 %935 }
 0x13b   : > { %1021 = vst.msk [vmem:[#allocation3 + $0x58] sm:$0xff] %vm1009_vm5, %v936_v20  ;;  %v1127_v21 = vpop.permute.xlu0 %1126  ;;  %v2589_v20 = vld [vmem:[%s2910_s20 + $0x78] sm:$0xff]  }
 0x13c   : > { %754 = vrot.lane.b32.xlu1 %v3308_v45, %s2716_s22  ;;  %1213 = vst.msk [vmem:[#allocation3 + $0x50] sm:$0xff] %vm1202_vm6, %v1127_v21  ;;  %v2588_v45 = vld [vmem:[%s2910_s20 + $0x70] sm:$0xff]   ;;  %v2573_v22 = vunpack.c.l.bf16 %v2589_v20 }
 0x13d   : > { %945 = vrot.lane.b32.xlu0 %v3067_v6, %s2717_s23  ;;  %v2569_v47 = vunpack.c.l.bf16 %v2588_v45  ;;  %v2570_v50 = vunpack.c.h.bf16 %v2588_v45 }
 0x13e   : > { %v1125_v23 = vpop.permute.xlu1 %1124  ;;  %396 = vst.msk [vmem:[#allocation2 + $0x2e8] sm:$0xff] %vm199_vm0, %v2573_v22 }
 0x13f   : > { %1212 = vst.msk [vmem:[#allocation3 + $0x48] sm:$0xff] %vm1202_vm6, %v1125_v23  ;;  %v1316_v26 = vpop.permute.xlu0 %1315  ;;  %v2574_v23 = vunpack.c.h.bf16 %v2589_v20  ;;  %v3656_v20 = vld [vmem:[#allocation2 + $0x2a9] sm:$0xff] }
 0x140   : > { %758 = vrot.lane.b32.xlu1 %v3371_v14, %s2716_s22  ;;  %1404 = vst.msk [vmem:[#allocation3 + $0x40] sm:$0xff] %vm1395_vm7, %v1316_v26 }
 0x141   : > { %949 = vrot.lane.b32.xlu0 %v3138_v34, %s2717_s23  ;;  %394 = vst.msk [vmem:[#allocation2 + $0x2c8] sm:$0xff] %vm199_vm0, %v2569_v47  ;;  %395 = vst.msk [vmem:[#allocation2 + $0x2d0] sm:$0xff] %vm199_vm0, %v2570_v50  ;;  %v3591_v50 = vld [vmem:[#allocation2 + $0x290] sm:$0xff] }
 0x142   : > { %v1129_v27 = vpop.permute.xlu1 %1128  ;;  %397 = vst.msk [vmem:[#allocation2 + $0x2f0] sm:$0xff] %vm199_vm0, %v2574_v23  ;;  %v3663_v23 = vld [vmem:[#allocation2 + $0x2b1] sm:$0xff] }
 0x143   : > { %1214 = vst.msk [vmem:[#allocation3 + $0x58] sm:$0xff] %vm1202_vm6, %v1129_v27  ;;  %v1320_v6 = vpop.permute.xlu0 %1319  ;;  %v1064_v27 = vld [vmem:[#allocation2 + $0x268] sm:$0xff] }
 0x144   : > { %947 = vrot.lane.b32.xlu1 %v3069_v7, %s2717_s23  ;;  %1406 = vst.msk [vmem:[#allocation3 + $0x50] sm:$0xff] %vm1395_vm7, %v1320_v6 }
 0x145   : > { %1138 = vrot.lane.b32.xlu0 %v3335_v57, %s2718_s24 }
 0x146   : > { %v1318_v28 = vpop.permute.xlu1 %1317 }
 0x147   : > { %1405 = vst.msk [vmem:[#allocation3 + $0x48] sm:$0xff] %vm1395_vm7, %v1318_v28  ;;  %v1510_v7 = vpop.permute.xlu0 %1509 }
 0x148   : > { %951 = vrot.lane.b32.xlu1 %v3140_v36, %s2717_s23  ;;  %1598 = vst.msk [vmem:[#allocation3 + $0x40] sm:$0xff] %vm1589_vm8, %v1510_v7  ;;  %v3465_v54 = vld [vmem:[#allocation2 + $0x2c7] sm:$0xff]  ;;  %v3467_v61 = vld [vmem:[#allocation2 + $0x2cf] sm:$0xff] }
 0x149   : > { %1142 = vrot.lane.b32.xlu0 %v3416_v30, %s2718_s24  ;;  %461 = vst.msk [vmem:[#allocation3 + $0xf0] sm:$0xff] %vm199_vm0, %v3465_v54  ;;  %462 = vst.msk [vmem:[#allocation3 + $0xf8] sm:$0xff] %vm199_vm0, %v3467_v61 }
 0x14a   : > { %v1322_v33 = vpop.permute.xlu1 %1321 }
 0x14b   : > { %1407 = vst.msk [vmem:[#allocation3 + $0x58] sm:$0xff] %vm1395_vm7, %v1322_v33  ;;  %v1514_v37 = vpop.permute.xlu0 %1513  ;;  %v3557_v33 = vld [vmem:[#allocation2 + $0x269] sm:$0xff] }
 0x14c   : > { %1140 = vrot.lane.b32.xlu1 %v3347_v63, %s2718_s24  ;;  %1600 = vst.msk [vmem:[#allocation3 + $0x50] sm:$0xff] %vm1589_vm8, %v1514_v37 }
 0x14d   : > { %1331 = vrot.lane.b32.xlu0 %v3362_v9, %s2719_s25 }
 0x14e   : > { %v1512_v35 = vpop.permute.xlu1 %1511 }
 0x14f   : > { %1599 = vst.msk [vmem:[#allocation3 + $0x48] sm:$0xff] %vm1589_vm8, %v1512_v35  ;;  %v1703_v39 = vpop.permute.xlu0 %1702  ;;  %v3564_v35 = vld [vmem:[#allocation2 + $0x271] sm:$0xff] }
 0x150   : > { %1144 = vrot.lane.b32.xlu1 %v3428_v49, %s2718_s24  ;;  %1791 = vst.msk [vmem:[#allocation3 + $0x40] sm:$0xff] %vm1782_vm9, %v1703_v39 }
 0x151   : > { %1335 = vrot.lane.b32.xlu0 %v3436_v38, %s2719_s25 }
 0x152   : > { %v1516_v42 = vpop.permute.xlu1 %1515 }
 0x153   : > { %1601 = vst.msk [vmem:[#allocation3 + $0x58] sm:$0xff] %vm1589_vm8, %v1516_v42  ;;  %v1707_v44 = vpop.permute.xlu0 %1706 }
 0x154   : > { %1333 = vrot.lane.b32.xlu1 %v3371_v14, %s2719_s25  ;;  %1793 = vst.msk [vmem:[#allocation3 + $0x50] sm:$0xff] %vm1782_vm9, %v1707_v44 }
 0x155   : > { %1525 = vrot.lane.b32.xlu0 %v3138_v34, %s2720_s26 }
 0x156   : > { %v1705_v46 = vpop.permute.xlu1 %1704 }
 0x157   : > { %1792 = vst.msk [vmem:[#allocation3 + $0x48] sm:$0xff] %vm1782_vm9, %v1705_v46  ;;  %v1896_v51 = vpop.permute.xlu0 %1895 }
 0x158   : > { %1337 = vrot.lane.b32.xlu1 %v3444_v43, %s2719_s25  ;;  %1984 = vst.msk [vmem:[#allocation3 + $0x40] sm:$0xff] %vm1975_vm10, %v1896_v51 }
 0x159   : > { %1529 = vrot.lane.b32.xlu0 %v3193_v58, %s2720_s26 }
 0x15a   : > { %v1709_v52 = vpop.permute.xlu1 %1708 }
 0x15b   : > { %1794 = vst.msk [vmem:[#allocation3 + $0x58] sm:$0xff] %vm1782_vm9, %v1709_v52  ;;  %v552_v34 = vpop.permute.xlu0 %551 }
 0x15c   : > { %1527 = vrot.lane.b32.xlu1 %v3140_v36, %s2720_s26  ;;  %636 = vst.msk [vmem:[#allocation3 + $0x60] sm:$0xff] %vm623_vm3, %v552_v34 }
 0x15d   : > { %1718 = vrot.lane.b32.xlu0 %v3416_v30, %s2721_s27 }
 0x15e   : > { %v1898_v53 = vpop.permute.xlu1 %1897 }
 0x15f   : > { %1985 = vst.msk [vmem:[#allocation3 + $0x48] sm:$0xff] %vm1975_vm10, %v1898_v53  ;;  %v1900_v36 = vpop.permute.xlu0 %1899  ;;  %v2016_v62 = vld [vmem:[#allocation3 + $0x40] sm:$0xff] }
 0x160   : > { %1531 = vrot.lane.b32.xlu1 %v3195_v59, %s2720_s26  ;;  %1986 = vst.msk [vmem:[#allocation3 + $0x50] sm:$0xff] %vm1975_vm10, %v1900_v36 }
 0x161   : > { %1722 = vrot.lane.b32.xlu0 %v3471_v55, %s2721_s27 }
 0x162   : > { %v554_v57 = vpop.permute.xlu1 %553 }
 0x163   : > { %637 = vst.msk [vmem:[#allocation3 + $0x68] sm:$0xff] %vm623_vm3, %v554_v57  ;;  %v556_v41 = vpop.permute.xlu0 %555 }
 0x164   : > { %1720 = vrot.lane.b32.xlu1 %v3428_v49, %s2721_s27  ;;  %638 = vst.msk [vmem:[#allocation3 + $0x70] sm:$0xff] %vm623_vm3, %v556_v41 }
 0x165   : > { %1911 = vrot.lane.b32.xlu0 %v3436_v38, %s2722_s30 }
 0x166   : > { %v1902_v63 = vpop.permute.xlu1 %1901  ;;  %v2017_v0 = vld [vmem:[#allocation3 + $0x48] sm:$0xff] }
 0x167   : > { %1987 = vst.msk [vmem:[#allocation3 + $0x58] sm:$0xff] %vm1975_vm10, %v1902_v63  ;;  %v2044_v1 = vpack.c.bf16 %v2017_v0, %v2016_v62  ;;  %v745_v2 = vpop.permute.xlu0 %744  ;;  %v2018_v4 = vld [vmem:[#allocation3 + $0x50] sm:$0xff] }
 0x168   : > { %1724 = vrot.lane.b32.xlu1 %v3483_v60, %s2721_s27  ;;  %829 = vst.msk [vmem:[#allocation3 + $0x60] sm:$0xff] %vm816_vm4, %v745_v2  ;;  %v1837_v62 = vld [vmem:[#allocation2 + $0x289] sm:$0xff] }
 0x169   : > { %2661 = vmatprep.mubr.msk.bf16.mxu0 %vm2083_vm11, %v2044_v1  ;;  %567 = vrot.lane.b32.xlu0 %v3416_v30, %s2715_s21  ;;  %v1838_v1 = vld [vmem:[#allocation2 + $0x291] sm:$0xff] }
 0x16a   : > { %v558_v3 = vpop.permute.xlu1 %557 }
 0x16b   : > { %639 = vst.msk [vmem:[#allocation3 + $0x78] sm:$0xff] %vm623_vm3, %v558_v3  ;;  %v749_v8 = vpop.permute.xlu0 %748 }
 0x16c   : > { %1913 = vrot.lane.b32.xlu1 %v3444_v43, %s2722_s30  ;;  %831 = vst.msk [vmem:[#allocation3 + $0x70] sm:$0xff] %vm816_vm4, %v749_v8 }
 0x16d   : > { %1915 = vrot.lane.b32.xlu0 %v3498_v5, %s2722_s30 }
 0x16e   : > { %v747_v9 = vpop.permute.xlu1 %746  ;;  %v2019_v10 = vld [vmem:[#allocation3 + $0x58] sm:$0xff] }
 0x16f   : > { %830 = vst.msk [vmem:[#allocation3 + $0x68] sm:$0xff] %vm816_vm4, %v747_v9  ;;  %v2045_v11 = vpack.c.bf16 %v2019_v10, %v2018_v4  ;;  %v938_v13 = vpop.permute.xlu0 %937 }
 0x170   : > { %569 = vrot.lane.b32.xlu1 %v3428_v49, %s2715_s21  ;;  %1022 = vst.msk [vmem:[#allocation3 + $0x60] sm:$0xff] %vm1009_vm5, %v938_v13 }
 0x171   : > { %2662 = vmatmul.mubr.msk.bf16.gmra.mxu0 %vm2083_vm11, %v2045_v11  ;;  %571 = vrot.lane.b32.xlu0 %v3471_v55, %s2715_s21 }
 0x172   : > { %v751_v14 = vpop.permute.xlu1 %750 }
 0x173   : > { %832 = vst.msk [vmem:[#allocation3 + $0x78] sm:$0xff] %vm816_vm4, %v751_v14  ;;  %v942_v15 = vpop.permute.xlu0 %941 }
 0x174   : > { %1917 = vrot.lane.b32.xlu1 %v1834_v12, %s2722_s30  ;;  %1024 = vst.msk [vmem:[#allocation3 + $0x70] sm:$0xff] %vm1009_vm5, %v942_v15 }
 0x175   : > { %760 = vrot.lane.b32.xlu0 %v3436_v38, %s2716_s22 }
 0x176   : > { %v940_v16 = vpop.permute.xlu1 %939 }
 0x177   : > { %1023 = vst.msk [vmem:[#allocation3 + $0x68] sm:$0xff] %vm1009_vm5, %v940_v16  ;;  %v1131_v17 = vpop.permute.xlu0 %1130 }
 0x178   : > { %573 = vrot.lane.b32.xlu1 %v3483_v60, %s2715_s21  ;;  %1215 = vst.msk [vmem:[#allocation3 + $0x60] sm:$0xff] %vm1202_vm6, %v1131_v17 }
 0x179   : > { %764 = vrot.lane.b32.xlu0 %v3498_v5, %s2716_s22 }
 0x17a   : > { %v944_v18 = vpop.permute.xlu1 %943 }
 0x17b   : > { %1025 = vst.msk [vmem:[#allocation3 + $0x78] sm:$0xff] %vm1009_vm5, %v944_v18  ;;  %v1135_v19 = vpop.permute.xlu0 %1134 }
 0x17c   : > { %762 = vrot.lane.b32.xlu1 %v3444_v43, %s2716_s22  ;;  %1217 = vst.msk [vmem:[#allocation3 + $0x70] sm:$0xff] %vm1202_vm6, %v1135_v19 }
 0x17d   : > { %953 = vrot.lane.b32.xlu0 %v3193_v58, %s2717_s23 }
 0x17e   : > { %v1133_v21 = vpop.permute.xlu1 %1132 }
 0x17f   : > { %1216 = vst.msk [vmem:[#allocation3 + $0x68] sm:$0xff] %vm1202_vm6, %v1133_v21  ;;  %v1324_v24 = vpop.permute.xlu0 %1323 }
 0x180   : > { %766 = vrot.lane.b32.xlu1 %v1834_v12, %s2716_s22  ;;  %1408 = vst.msk [vmem:[#allocation3 + $0x60] sm:$0xff] %vm1395_vm7, %v1324_v24 }
 0x181   : > { %957 = vrot.lane.b32.xlu0 %v3274_v31, %s2717_s23 }
 0x182   : > { %v1137_v25 = vpop.permute.xlu1 %1136 }
 0x183   : > { %1218 = vst.msk [vmem:[#allocation3 + $0x78] sm:$0xff] %vm1202_vm6, %v1137_v25  ;;  %v1328_v26 = vpop.permute.xlu0 %1327 }
 0x184   : > { %955 = vrot.lane.b32.xlu1 %v3195_v59, %s2717_s23  ;;  %1410 = vst.msk [vmem:[#allocation3 + $0x70] sm:$0xff] %vm1395_vm7, %v1328_v26  ;;  %v3549_v59 = vld [vmem:[#allocation2 + $0x270] sm:$0xff] }
 0x185   : > { %1146 = vrot.lane.b32.xlu0 %v3471_v55, %s2718_s24 }
 0x186   : > { %v1326_v58 = vpop.permute.xlu1 %1325 }
 0x187   : > { %1409 = vst.msk [vmem:[#allocation3 + $0x68] sm:$0xff] %vm1395_vm7, %v1326_v58  ;;  %v1518_v6 = vpop.permute.xlu0 %1517 }
 0x188   : > { %959 = vrot.lane.b32.xlu1 %v3276_v32, %s2717_s23  ;;  %1602 = vst.msk [vmem:[#allocation3 + $0x60] sm:$0xff] %vm1589_vm8, %v1518_v6 }
 0x189   : > { %1150 = vrot.lane.b32.xlu0 %v1064_v27, %s2718_s24 }
 0x18a   : > { %v1330_v28 = vpop.permute.xlu1 %1329 }
 0x18b   : > { %1411 = vst.msk [vmem:[#allocation3 + $0x78] sm:$0xff] %vm1395_vm7, %v1330_v28  ;;  %v1522_v30 = vpop.permute.xlu0 %1521 }
 0x18c   : > { %1148 = vrot.lane.b32.xlu1 %v3483_v60, %s2718_s24  ;;  %1604 = vst.msk [vmem:[#allocation3 + $0x70] sm:$0xff] %vm1589_vm8, %v1522_v30  ;;  %v3690_v30 = vld [vmem:[#allocation2 + $0x2d0] sm:$0xff] }
 0x18d   : > { %1339 = vrot.lane.b32.xlu0 %v3498_v5, %s2719_s25 }
 0x18e   : > { %v1520_v7 = vpop.permute.xlu1 %1519 }
 0x18f   : > { %1603 = vst.msk [vmem:[#allocation3 + $0x68] sm:$0xff] %vm1589_vm8, %v1520_v7  ;;  %v1711_v49 = vpop.permute.xlu0 %1710 }
 0x190   : > { %1152 = vrot.lane.b32.xlu1 %v3549_v59, %s2718_s24  ;;  %1795 = vst.msk [vmem:[#allocation3 + $0x60] sm:$0xff] %vm1782_vm9, %v1711_v49 }
 0x191   : > { %1343 = vrot.lane.b32.xlu0 %v3557_v33, %s2719_s25 }
 0x192   : > { %v1524_v37 = vpop.permute.xlu1 %1523 }
 0x193   : > { %1605 = vst.msk [vmem:[#allocation3 + $0x78] sm:$0xff] %vm1589_vm8, %v1524_v37  ;;  %v1715_v38 = vpop.permute.xlu0 %1714 }
 0x194   : > { %1341 = vrot.lane.b32.xlu1 %v1834_v12, %s2719_s25  ;;  %1797 = vst.msk [vmem:[#allocation3 + $0x70] sm:$0xff] %vm1782_vm9, %v1715_v38 }
 0x195   : > { %1533 = vrot.lane.b32.xlu0 %v3274_v31, %s2720_s26  ;;  %v3583_v31 = vld [vmem:[#allocation2 + $0x288] sm:$0xff] }
 0x196   : > { %v1713_v39 = vpop.permute.xlu1 %1712 }
 0x197   : > { %1796 = vst.msk [vmem:[#allocation3 + $0x68] sm:$0xff] %vm1782_vm9, %v1713_v39  ;;  %v1904_v42 = vpop.permute.xlu0 %1903 }
 0x198   : > { %1345 = vrot.lane.b32.xlu1 %v3564_v35, %s2719_s25  ;;  %1988 = vst.msk [vmem:[#allocation3 + $0x60] sm:$0xff] %vm1975_vm10, %v1904_v42  ;;  %v1841_v42 = vld [vmem:[#allocation2 + $0x2c9] sm:$0xff] }
 0x199   : > { %1537 = vrot.lane.b32.xlu0 %v3329_v56, %s2720_s26 }
 0x19a   : > { %v1717_v43 = vpop.permute.xlu1 %1716 }
 0x19b   : > { %1798 = vst.msk [vmem:[#allocation3 + $0x78] sm:$0xff] %vm1782_vm9, %v1717_v43  ;;  %v560_v44 = vpop.permute.xlu0 %559 }
 0x19c   : > { %1535 = vrot.lane.b32.xlu1 %v3276_v32, %s2720_s26  ;;  %640 = vst.msk [vmem:[#allocation3 + $0x80] sm:$0xff] %vm623_vm3, %v560_v44 }
 0x19d   : > { %1726 = vrot.lane.b32.xlu0 %v1064_v27, %s2721_s27 }
 0x19e   : > { %v1906_v45 = vpop.permute.xlu1 %1905 }
 0x19f   : > { %1989 = vst.msk [vmem:[#allocation3 + $0x68] sm:$0xff] %vm1975_vm10, %v1906_v45  ;;  %v1908_v46 = vpop.permute.xlu0 %1907  ;;  %v2020_v32 = vld [vmem:[#allocation3 + $0x60] sm:$0xff] }
 0x1a0   : > { %1539 = vrot.lane.b32.xlu1 %v3331_v40, %s2720_s26  ;;  %1990 = vst.msk [vmem:[#allocation3 + $0x70] sm:$0xff] %vm1975_vm10, %v1908_v46  ;;  %v1842_v46 = vld [vmem:[#allocation2 + $0x2d1] sm:$0xff] }
 0x1a1   : > { %1730 = vrot.lane.b32.xlu0 %v3583_v31, %s2721_s27 }
 0x1a2   : > { %v562_v47 = vpop.permute.xlu1 %561 }
 0x1a3   : > { %641 = vst.msk [vmem:[#allocation3 + $0x88] sm:$0xff] %vm623_vm3, %v562_v47  ;;  %v564_v51 = vpop.permute.xlu0 %563 }
 0x1a4   : > { %1728 = vrot.lane.b32.xlu1 %v3549_v59, %s2721_s27  ;;  %642 = vst.msk [vmem:[#allocation3 + $0x90] sm:$0xff] %vm623_vm3, %v564_v51 }
 0x1a5   : > { %1919 = vrot.lane.b32.xlu0 %v3557_v33, %s2722_s30 }
 0x1a6   : > { %v1910_v52 = vpop.permute.xlu1 %1909  ;;  %v2021_v34 = vld [vmem:[#allocation3 + $0x68] sm:$0xff] }
 0x1a7   : > { %1991 = vst.msk [vmem:[#allocation3 + $0x78] sm:$0xff] %vm1975_vm10, %v1910_v52  ;;  %v2046_v53 = vpack.c.bf16 %v2021_v34, %v2020_v32  ;;  %v753_v55 = vpop.permute.xlu0 %752  ;;  %v2022_v57 = vld [vmem:[#allocation3 + $0x70] sm:$0xff] }
 0x1a8   : > { %1732 = vrot.lane.b32.xlu1 %v3591_v50, %s2721_s27  ;;  %833 = vst.msk [vmem:[#allocation3 + $0x80] sm:$0xff] %vm816_vm4, %v753_v55 }
 0x1a9   : > { %2665 = vmatprep.mubr.msk.bf16.mxu0 %vm2083_vm11, %v2046_v53  ;;  %575 = vrot.lane.b32.xlu0 %v1064_v27, %s2715_s21 }
 0x1aa   : > { %v566_v36 = vpop.permute.xlu1 %565 }
 0x1ab   : > { %643 = vst.msk [vmem:[#allocation3 + $0x98] sm:$0xff] %vm623_vm3, %v566_v36  ;;  %v757_v60 = vpop.permute.xlu0 %756  ;;  %v879_v36 = vld [vmem:[#allocation2 + $0x2e7] sm:$0xff] }
 0x1ac   : > { %1921 = vrot.lane.b32.xlu1 %v3564_v35, %s2722_s30  ;;  %835 = vst.msk [vmem:[#allocation3 + $0x90] sm:$0xff] %vm816_vm4, %v757_v60  ;;  %v880_v60 = vld [vmem:[#allocation2 + $0x2ef] sm:$0xff] }
 0x1ad   : > { %1923 = vrot.lane.b32.xlu0 %v1837_v62, %s2722_s30 }
 0x1ae   : > { %v755_v41 = vpop.permute.xlu1 %754  ;;  %v2023_v63 = vld [vmem:[#allocation3 + $0x78] sm:$0xff] }
 0x1af   : > { %834 = vst.msk [vmem:[#allocation3 + $0x88] sm:$0xff] %vm816_vm4, %v755_v41  ;;  %v2047_v0 = vpack.c.bf16 %v2023_v63, %v2022_v57  ;;  %v946_v2 = vpop.permute.xlu0 %945 }
 0x1b0   : > { %577 = vrot.lane.b32.xlu1 %v3549_v59, %s2715_s21  ;;  %1026 = vst.msk [vmem:[#allocation3 + $0x80] sm:$0xff] %vm1009_vm5, %v946_v2 }
 0x1b1   : > { %2666 = vmatmul.mubr.msk.bf16.gmra.mxu0 %vm2083_vm11, %v2047_v0  ;;  %579 = vrot.lane.b32.xlu0 %v3583_v31, %s2715_s21 }
 0x1b2   : > { %v759_v3 = vpop.permute.xlu1 %758 }
 0x1b3   : > { %836 = vst.msk [vmem:[#allocation3 + $0x98] sm:$0xff] %vm816_vm4, %v759_v3  ;;  %v950_v4 = vpop.permute.xlu0 %949 }
 0x1b4   : > { %1925 = vrot.lane.b32.xlu1 %v1838_v1, %s2722_s30  ;;  %1028 = vst.msk [vmem:[#allocation3 + $0x90] sm:$0xff] %vm1009_vm5, %v950_v4  ;;  %v1265_v4 = vld [vmem:[#allocation2 + $0x2e9] sm:$0xff] }
 0x1b5   : > { %768 = vrot.lane.b32.xlu0 %v3557_v33, %s2716_s22 }
 0x1b6   : > { %v948_v5 = vpop.permute.xlu1 %947 }
 0x1b7   : > { %1027 = vst.msk [vmem:[#allocation3 + $0x88] sm:$0xff] %vm1009_vm5, %v948_v5  ;;  %v1139_v8 = vpop.permute.xlu0 %1138 }
 0x1b8   : > { %581 = vrot.lane.b32.xlu1 %v3591_v50, %s2715_s21  ;;  %1219 = vst.msk [vmem:[#allocation3 + $0x80] sm:$0xff] %vm1202_vm6, %v1139_v8 }
 0x1b9   : > { %772 = vrot.lane.b32.xlu0 %v1837_v62, %s2716_s22 }
 0x1ba   : > { %v952_v9 = vpop.permute.xlu1 %951 }
 0x1bb   : > { %1029 = vst.msk [vmem:[#allocation3 + $0x98] sm:$0xff] %vm1009_vm5, %v952_v9  ;;  %v1143_v10 = vpop.permute.xlu0 %1142  ;;  %v1266_v9 = vld [vmem:[#allocation2 + $0x2f1] sm:$0xff] }
 0x1bc   : > { %770 = vrot.lane.b32.xlu1 %v3564_v35, %s2716_s22  ;;  %1221 = vst.msk [vmem:[#allocation3 + $0x90] sm:$0xff] %vm1202_vm6, %v1143_v10 }
 0x1bd   : > { %961 = vrot.lane.b32.xlu0 %v3329_v56, %s2717_s23  ;;  %v1068_v56 = vld [vmem:[#allocation2 + $0x2a8] sm:$0xff] }
 0x1be   : > { %v1141_v11 = vpop.permute.xlu1 %1140 }
 0x1bf   : > { %1220 = vst.msk [vmem:[#allocation3 + $0x88] sm:$0xff] %vm1202_vm6, %v1141_v11  ;;  %v1332_v12 = vpop.permute.xlu0 %1331 }
 0x1c0   : > { %774 = vrot.lane.b32.xlu1 %v1838_v1, %s2716_s22  ;;  %1412 = vst.msk [vmem:[#allocation3 + $0x80] sm:$0xff] %vm1395_vm7, %v1332_v12  ;;  %v1459_v12 = vld [vmem:[#allocation2 + $0x307] sm:$0xff] }
 0x1c1   : > { %965 = vrot.lane.b32.xlu0 %v3410_v29, %s2717_s23 }
 0x1c2   : > { %v1145_v13 = vpop.permute.xlu1 %1144 }
 0x1c3   : > { %1222 = vst.msk [vmem:[#allocation3 + $0x98] sm:$0xff] %vm1202_vm6, %v1145_v13  ;;  %v1336_v14 = vpop.permute.xlu0 %1335 }
 0x1c4   : > { %963 = vrot.lane.b32.xlu1 %v3331_v40, %s2717_s23  ;;  %1414 = vst.msk [vmem:[#allocation3 + $0x90] sm:$0xff] %vm1395_vm7, %v1336_v14  ;;  %v3649_v40 = vld [vmem:[#allocation2 + $0x2b0] sm:$0xff] }
 0x1c5   : > { %1154 = vrot.lane.b32.xlu0 %v3583_v31, %s2718_s24 }
 0x1c6   : > { %v1334_v15 = vpop.permute.xlu1 %1333 }
 0x1c7   : > { %1413 = vst.msk [vmem:[#allocation3 + $0x88] sm:$0xff] %vm1395_vm7, %v1334_v15  ;;  %v1526_v16 = vpop.permute.xlu0 %1525  ;;  %v1460_v15 = vld [vmem:[#allocation2 + $0x30f] sm:$0xff] }
 0x1c8   : > { %967 = vrot.lane.b32.xlu1 %v3412_v48, %s2717_s23  ;;  %1606 = vst.msk [vmem:[#allocation3 + $0x80] sm:$0xff] %vm1589_vm8, %v1526_v16 }
 0x1c9   : > { %1158 = vrot.lane.b32.xlu0 %v1068_v56, %s2718_s24 }
 0x1ca   : > { %v1338_v17 = vpop.permute.xlu1 %1337 }
 0x1cb   : > { %1415 = vst.msk [vmem:[#allocation3 + $0x98] sm:$0xff] %vm1395_vm7, %v1338_v17  ;;  %v1530_v18 = vpop.permute.xlu0 %1529  ;;  %v1652_v17 = vld [vmem:[#allocation2 + $0x308] sm:$0xff] }
 0x1cc   : > { %1156 = vrot.lane.b32.xlu1 %v3591_v50, %s2718_s24  ;;  %1608 = vst.msk [vmem:[#allocation3 + $0x90] sm:$0xff] %vm1589_vm8, %v1530_v18 }
 0x1cd   : > { %1347 = vrot.lane.b32.xlu0 %v1837_v62, %s2719_s25 }
 0x1ce   : > { %v1528_v19 = vpop.permute.xlu1 %1527 }
 0x1cf   : > { %1607 = vst.msk [vmem:[#allocation3 + $0x88] sm:$0xff] %vm1589_vm8, %v1528_v19  ;;  %v1719_v21 = vpop.permute.xlu0 %1718 }
 0x1d0   : > { %1160 = vrot.lane.b32.xlu1 %v3649_v40, %s2718_s24  ;;  %1799 = vst.msk [vmem:[#allocation3 + $0x80] sm:$0xff] %vm1782_vm9, %v1719_v21 }
 0x1d1   : > { %1351 = vrot.lane.b32.xlu0 %v3656_v20, %s2719_s25 }
 0x1d2   : > { %v1532_v22 = vpop.permute.xlu1 %1531 }
 0x1d3   : > { %1609 = vst.msk [vmem:[#allocation3 + $0x98] sm:$0xff] %vm1589_vm8, %v1532_v22  ;;  %v1723_v24 = vpop.permute.xlu0 %1722 }
 0x1d4   : > { %1349 = vrot.lane.b32.xlu1 %v1838_v1, %s2719_s25  ;;  %1801 = vst.msk [vmem:[#allocation3 + $0x90] sm:$0xff] %vm1782_vm9, %v1723_v24 }
 0x1d5   : > { %1541 = vrot.lane.b32.xlu0 %v3410_v29, %s2720_s26  ;;  %v3682_v29 = vld [vmem:[#allocation2 + $0x2c8] sm:$0xff] }
 0x1d6   : > { %v1721_v25 = vpop.permute.xlu1 %1720 }
 0x1d7   : > { %1800 = vst.msk [vmem:[#allocation3 + $0x88] sm:$0xff] %vm1782_vm9, %v1721_v25  ;;  %v1912_v26 = vpop.permute.xlu0 %1911  ;;  %v1845_v25 = vld [vmem:[#allocation2 + $0x309] sm:$0xff] }
 0x1d8   : > { %1353 = vrot.lane.b32.xlu1 %v3663_v23, %s2719_s25  ;;  %1992 = vst.msk [vmem:[#allocation3 + $0x80] sm:$0xff] %vm1975_vm10, %v1912_v26 }
 0x1d9   : > { %1545 = vrot.lane.b32.xlu0 %v3465_v54, %s2720_s26 }
 0x1da   : > { %v1725_v58 = vpop.permute.xlu1 %1724 }
 0x1db   : > { %1802 = vst.msk [vmem:[#allocation3 + $0x98] sm:$0xff] %vm1782_vm9, %v1725_v58  ;;  %v568_v27 = vpop.permute.xlu0 %567 }
 0x1dc   : > { %1543 = vrot.lane.b32.xlu1 %v3412_v48, %s2720_s26  ;;  %644 = vst.msk [vmem:[#allocation3 + $0xa0] sm:$0xff] %vm623_vm3, %v568_v27 }
 0x1dd   : > { %1734 = vrot.lane.b32.xlu0 %v1068_v56, %s2721_s27 }
 0x1de   : > { %v1914_v6 = vpop.permute.xlu1 %1913 }
 0x1df   : > { %1993 = vst.msk [vmem:[#allocation3 + $0x88] sm:$0xff] %vm1975_vm10, %v1914_v6  ;;  %v1916_v28 = vpop.permute.xlu0 %1915  ;;  %v2024_v48 = vld [vmem:[#allocation3 + $0x80] sm:$0xff]  ;;  %v1846_v6 = vld [vmem:[#allocation2 + $0x311] sm:$0xff] }
 0x1e0   : > { %1547 = vrot.lane.b32.xlu1 %v3467_v61, %s2720_s26  ;;  %1994 = vst.msk [vmem:[#allocation3 + $0x90] sm:$0xff] %vm1975_vm10, %v1916_v28 }
 0x1e1   : > { %1738 = vrot.lane.b32.xlu0 %v3682_v29, %s2721_s27 }
 0x1e2   : > { %v570_v59 = vpop.permute.xlu1 %569 }
 0x1e3   : > { %645 = vst.msk [vmem:[#allocation3 + $0xa8] sm:$0xff] %vm623_vm3, %v570_v59  ;;  %v572_v7 = vpop.permute.xlu0 %571 }
 0x1e4   : > { %1736 = vrot.lane.b32.xlu1 %v3649_v40, %s2721_s27  ;;  %646 = vst.msk [vmem:[#allocation3 + $0xb0] sm:$0xff] %vm623_vm3, %v572_v7 }
 0x1e5   : > { %1927 = vrot.lane.b32.xlu0 %v3656_v20, %s2722_s30 }
 0x1e6   : > { %v1918_v33 = vpop.permute.xlu1 %1917  ;;  %v2025_v49 = vld [vmem:[#allocation3 + $0x88] sm:$0xff] }
 0x1e7   : > { %1995 = vst.msk [vmem:[#allocation3 + $0x98] sm:$0xff] %vm1975_vm10, %v1918_v33  ;;  %v2048_v37 = vpack.c.bf16 %v2025_v49, %v2024_v48  ;;  %v761_v35 = vpop.permute.xlu0 %760  ;;  %v2026_v39 = vld [vmem:[#allocation3 + $0x90] sm:$0xff] }
 0x1e8   : > { %1740 = vrot.lane.b32.xlu1 %v3690_v30, %s2721_s27  ;;  %837 = vst.msk [vmem:[#allocation3 + $0xa0] sm:$0xff] %vm816_vm4, %v761_v35 }
 0x1e9   : > { %2669 = vmatprep.mubr.msk.bf16.mxu0 %vm2083_vm11, %v2048_v37  ;;  %583 = vrot.lane.b32.xlu0 %v1068_v56, %s2715_s21 }
 0x1ea   : > { %v574_v38 = vpop.permute.xlu1 %573 }
 0x1eb   : > { %647 = vst.msk [vmem:[#allocation3 + $0xb8] sm:$0xff] %vm623_vm3, %v574_v38  ;;  %v765_v43 = vpop.permute.xlu0 %764 }
 0x1ec   : > { %1929 = vrot.lane.b32.xlu1 %v3663_v23, %s2722_s30  ;;  %839 = vst.msk [vmem:[#allocation3 + $0xb0] sm:$0xff] %vm816_vm4, %v765_v43 }
 0x1ed   : > { %1931 = vrot.lane.b32.xlu0 %v1841_v42, %s2722_s30 }
 0x1ee   : > { %v763_v44 = vpop.permute.xlu1 %762  ;;  %v2027_v45 = vld [vmem:[#allocation3 + $0x98] sm:$0xff] }
 0x1ef   : > { %838 = vst.msk [vmem:[#allocation3 + $0xa8] sm:$0xff] %vm816_vm4, %v763_v44  ;;  %v2049_v31 = vpack.c.bf16 %v2027_v45, %v2026_v39  ;;  %v954_v47 = vpop.permute.xlu0 %953 }
 0x1f0   : > { %585 = vrot.lane.b32.xlu1 %v3649_v40, %s2715_s21  ;;  %1030 = vst.msk [vmem:[#allocation3 + $0xa0] sm:$0xff] %vm1009_vm5, %v954_v47 }
 0x1f1   : > { %2670 = vmatmul.mubr.msk.bf16.gmra.mxu0 %vm2083_vm11, %v2049_v31  ;;  %587 = vrot.lane.b32.xlu0 %v3682_v29, %s2715_s21 }
 0x1f2   : > { %v767_v32 = vpop.permute.xlu1 %766 }
 0x1f3   : > { %840 = vst.msk [vmem:[#allocation3 + $0xb8] sm:$0xff] %vm816_vm4, %v767_v32  ;;  %v958_v50 = vpop.permute.xlu0 %957 }
 0x1f4   : > { %1933 = vrot.lane.b32.xlu1 %v1842_v46, %s2722_s30  ;;  %1032 = vst.msk [vmem:[#allocation3 + $0xb0] sm:$0xff] %vm1009_vm5, %v958_v50 }
 0x1f5   : > { %776 = vrot.lane.b32.xlu0 %v3656_v20, %s2716_s22  ;;  %v1653_v20 = vld [vmem:[#allocation2 + $0x310] sm:$0xff] }
 0x1f6   : > { %v956_v51 = vpop.permute.xlu1 %955 }
 0x1f7   : > { %1031 = vst.msk [vmem:[#allocation3 + $0xa8] sm:$0xff] %vm1009_vm5, %v956_v51  ;;  %v1147_v52 = vpop.permute.xlu0 %1146 }
 0x1f8   : > { %589 = vrot.lane.b32.xlu1 %v3690_v30, %s2715_s21  ;;  %1223 = vst.msk [vmem:[#allocation3 + $0xa0] sm:$0xff] %vm1202_vm6, %v1147_v52  ;;  %s2508_s21 = sshll.u32 %s3945_s16, 3 }
 0x1f9   : > { %780 = vrot.lane.b32.xlu0 %v1841_v42, %s2716_s22 }
 0x1fa   : > { %v960_v34 = vpop.permute.xlu1 %959 }
 0x1fb   : > { %1033 = vst.msk [vmem:[#allocation3 + $0xb8] sm:$0xff] %vm1009_vm5, %v960_v34  ;;  %v1151_v53 = vpop.permute.xlu0 %1150 }
 0x1fc   : > { %778 = vrot.lane.b32.xlu1 %v3663_v23, %s2716_s22  ;;  %1225 = vst.msk [vmem:[#allocation3 + $0xb0] sm:$0xff] %vm1202_vm6, %v1151_v53 }
 0x1fd   : > { %969 = vrot.lane.b32.xlu0 %v3465_v54, %s2717_s23  ;;  %v1072_v54 = vld [vmem:[#allocation2 + $0x2e8] sm:$0xff] }
 0x1fe   : > { %v1149_v55 = vpop.permute.xlu1 %1148 }
 0x1ff   : > { %1224 = vst.msk [vmem:[#allocation3 + $0xa8] sm:$0xff] %vm1202_vm6, %v1149_v55  ;;  %v1340_v57 = vpop.permute.xlu0 %1339 }
 0x200   : > { %782 = vrot.lane.b32.xlu1 %v1842_v46, %s2716_s22  ;;  %1416 = vst.msk [vmem:[#allocation3 + $0xa0] sm:$0xff] %vm1395_vm7, %v1340_v57 }
 0x201   : > { %973 = vrot.lane.b32.xlu0 %v879_v36, %s2717_s23 }
 0x202   : > { %v1153_v62 = vpop.permute.xlu1 %1152 }
 0x203   : > { %1226 = vst.msk [vmem:[#allocation3 + $0xb8] sm:$0xff] %vm1202_vm6, %v1153_v62  ;;  %v1344_v41 = vpop.permute.xlu0 %1343 }
 0x204   : > { %971 = vrot.lane.b32.xlu1 %v3467_v61, %s2717_s23  ;;  %1418 = vst.msk [vmem:[#allocation3 + $0xb0] sm:$0xff] %vm1395_vm7, %v1344_v41  ;;  %v1073_v61 = vld [vmem:[#allocation2 + $0x2f0] sm:$0xff] }
 0x205   : > { %1162 = vrot.lane.b32.xlu0 %v3682_v29, %s2718_s24 }
 0x206   : > { %v1342_v63 = vpop.permute.xlu1 %1341 }
 0x207   : > { %1417 = vst.msk [vmem:[#allocation3 + $0xa8] sm:$0xff] %vm1395_vm7, %v1342_v63  ;;  %v1534_v0 = vpop.permute.xlu0 %1533 }
 0x208   : > { %975 = vrot.lane.b32.xlu1 %v880_v60, %s2717_s23  ;;  %1610 = vst.msk [vmem:[#allocation3 + $0xa0] sm:$0xff] %vm1589_vm8, %v1534_v0 }
 0x209   : > { %1166 = vrot.lane.b32.xlu0 %v1072_v54, %s2718_s24 }
 0x20a   : > { %v1346_v1 = vpop.permute.xlu1 %1345 }
 0x20b   : > { %1419 = vst.msk [vmem:[#allocation3 + $0xb8] sm:$0xff] %vm1395_vm7, %v1346_v1  ;;  %v1538_v2 = vpop.permute.xlu0 %1537 }
 0x20c   : > { %1164 = vrot.lane.b32.xlu1 %v3690_v30, %s2718_s24  ;;  %1612 = vst.msk [vmem:[#allocation3 + $0xb0] sm:$0xff] %vm1589_vm8, %v1538_v2 }
 0x20d   : > { %1355 = vrot.lane.b32.xlu0 %v1841_v42, %s2719_s25 }
 0x20e   : > { %v1536_v3 = vpop.permute.xlu1 %1535 }
 0x20f   : > { %1611 = vst.msk [vmem:[#allocation3 + $0xa8] sm:$0xff] %vm1589_vm8, %v1536_v3  ;;  %v1727_v5 = vpop.permute.xlu0 %1726 }
 0x210   : > { %1168 = vrot.lane.b32.xlu1 %v1073_v61, %s2718_s24  ;;  %1803 = vst.msk [vmem:[#allocation3 + $0xa0] sm:$0xff] %vm1782_vm9, %v1727_v5  ;;  %s197_s24 = scalar_lea.vmem %s3943_s4, %s2508_s21 }
 0x211   : > { %1359 = vrot.lane.b32.xlu0 %v1265_v4, %s2719_s25 }
 0x212   : > { %v1540_v8 = vpop.permute.xlu1 %1539 }
 0x213   : > { %1613 = vst.msk [vmem:[#allocation3 + $0xb8] sm:$0xff] %vm1589_vm8, %v1540_v8  ;;  %v1731_v10 = vpop.permute.xlu0 %1730 }
 0x214   : > { %1357 = vrot.lane.b32.xlu1 %v1842_v46, %s2719_s25  ;;  %1805 = vst.msk [vmem:[#allocation3 + $0xb0] sm:$0xff] %vm1782_vm9, %v1731_v10 }
 0x215   : > { %1549 = vrot.lane.b32.xlu0 %v879_v36, %s2720_s26 }
 0x216   : > { %v1729_v11 = vpop.permute.xlu1 %1728 }
 0x217   : > { %1804 = vst.msk [vmem:[#allocation3 + $0xa8] sm:$0xff] %vm1782_vm9, %v1729_v11  ;;  %v1920_v13 = vpop.permute.xlu0 %1919 }
 0x218   : > { %1361 = vrot.lane.b32.xlu1 %v1266_v9, %s2719_s25  ;;  %1996 = vst.msk [vmem:[#allocation3 + $0xa0] sm:$0xff] %vm1975_vm10, %v1920_v13 }
 0x219   : > { %1553 = vrot.lane.b32.xlu0 %v1459_v12, %s2720_s26 }
 0x21a   : > { %v1733_v14 = vpop.permute.xlu1 %1732 }
 0x21b   : > { %1806 = vst.msk [vmem:[#allocation3 + $0xb8] sm:$0xff] %vm1782_vm9, %v1733_v14  ;;  %v576_v56 = vpop.permute.xlu0 %575 }
 0x21c   : > { %1551 = vrot.lane.b32.xlu1 %v880_v60, %s2720_s26  ;;  %648 = vst.msk [vmem:[#allocation3 + $0xc0] sm:$0xff] %vm623_vm3, %v576_v56 }
 0x21d   : > { %1742 = vrot.lane.b32.xlu0 %v1072_v54, %s2721_s27 }
 0x21e   : > { %v1922_v16 = vpop.permute.xlu1 %1921 }
 0x21f   : > { %1997 = vst.msk [vmem:[#allocation3 + $0xa8] sm:$0xff] %vm1975_vm10, %v1922_v16  ;;  %v1924_v40 = vpop.permute.xlu0 %1923  ;;  %v2028_v19 = vld [vmem:[#allocation3 + $0xa0] sm:$0xff] }
 0x220   : > { %1555 = vrot.lane.b32.xlu1 %v1460_v15, %s2720_s26  ;;  %1998 = vst.msk [vmem:[#allocation3 + $0xb0] sm:$0xff] %vm1975_vm10, %v1924_v40 }
 0x221   : > { %1746 = vrot.lane.b32.xlu0 %v1652_v17, %s2721_s27 }
 0x222   : > { %v578_v18 = vpop.permute.xlu1 %577 }
 0x223   : > { %649 = vst.msk [vmem:[#allocation3 + $0xc8] sm:$0xff] %vm623_vm3, %v578_v18  ;;  %v580_v21 = vpop.permute.xlu0 %579 }
 0x224   : > { %1744 = vrot.lane.b32.xlu1 %v1073_v61, %s2721_s27  ;;  %650 = vst.msk [vmem:[#allocation3 + $0xd0] sm:$0xff] %vm623_vm3, %v580_v21 }
 0x225   : > { %1935 = vrot.lane.b32.xlu0 %v1265_v4, %s2722_s30 }
 0x226   : > { %v1926_v22 = vpop.permute.xlu1 %1925  ;;  %v2029_v23 = vld [vmem:[#allocation3 + $0xa8] sm:$0xff] }
 0x227   : > { %1999 = vst.msk [vmem:[#allocation3 + $0xb8] sm:$0xff] %vm1975_vm10, %v1926_v22  ;;  %v2050_v24 = vpack.c.bf16 %v2029_v23, %v2028_v19  ;;  %v769_v26 = vpop.permute.xlu0 %768  ;;  %v2030_v27 = vld [vmem:[#allocation3 + $0xb0] sm:$0xff] }
 0x228   : > { %1748 = vrot.lane.b32.xlu1 %v1653_v20, %s2721_s27  ;;  %841 = vst.msk [vmem:[#allocation3 + $0xc0] sm:$0xff] %vm816_vm4, %v769_v26 }
 0x229   : > { %2673 = vmatprep.mubr.msk.bf16.mxu0 %vm2083_vm11, %v2050_v24  ;;  %1939 = vrot.lane.b32.xlu0 %v1845_v25, %s2722_s30 }
 0x22a   : > { %v582_v58 = vpop.permute.xlu1 %581 }
 0x22b   : > { %651 = vst.msk [vmem:[#allocation3 + $0xd8] sm:$0xff] %vm623_vm3, %v582_v58  ;;  %v773_v29 = vpop.permute.xlu0 %772 }
 0x22c   : > { %1937 = vrot.lane.b32.xlu1 %v1266_v9, %s2722_s30  ;;  %843 = vst.msk [vmem:[#allocation3 + $0xd0] sm:$0xff] %vm816_vm4, %v773_v29 }
 0x22e   : > { %v771_v28 = vpop.permute.xlu1 %770  ;;  %v2031_v59 = vld [vmem:[#allocation3 + $0xb8] sm:$0xff] }
 0x22f   : > { %842 = vst.msk [vmem:[#allocation3 + $0xc8] sm:$0xff] %vm816_vm4, %v771_v28  ;;  %v2051_v48 = vpack.c.bf16 %v2031_v59, %v2030_v27  ;;  %v962_v30 = vpop.permute.xlu0 %961 }
 0x230   : > { %1941 = vrot.lane.b32.xlu1 %v1846_v6, %s2722_s30  ;;  %1034 = vst.msk [vmem:[#allocation3 + $0xc0] sm:$0xff] %vm1009_vm5, %v962_v30 }
 0x231   : > { %2674 = vmatmul.mubr.msk.bf16.gmra.mxu0 %vm2083_vm11, %v2051_v48 }
 0x232   : > { %v775_v7 = vpop.permute.xlu1 %774 }
 0x233   : > { %844 = vst.msk [vmem:[#allocation3 + $0xd8] sm:$0xff] %vm816_vm4, %v775_v7  ;;  %v966_v33 = vpop.permute.xlu0 %965 }
 0x234   : > { %1036 = vst.msk [vmem:[#allocation3 + $0xd0] sm:$0xff] %vm1009_vm5, %v966_v33 }
 0x236   : > { %v964_v49 = vpop.permute.xlu1 %963 }
 0x237   : > { %1035 = vst.msk [vmem:[#allocation3 + $0xc8] sm:$0xff] %vm1009_vm5, %v964_v49  ;;  %v1155_v37 = vpop.permute.xlu0 %1154 }
 0x238   : > { %1227 = vst.msk [vmem:[#allocation3 + $0xc0] sm:$0xff] %vm1202_vm6, %v1155_v37 }
 0x23a   : > { %v968_v35 = vpop.permute.xlu1 %967 }
 0x23b   : > { %1037 = vst.msk [vmem:[#allocation3 + $0xd8] sm:$0xff] %vm1009_vm5, %v968_v35  ;;  %v1159_v38 = vpop.permute.xlu0 %1158  ;;  %v3844_v35 = vpop.f32.mrf.mxu0 }
 0x23c   : > { %1229 = vst.msk [vmem:[#allocation3 + $0xd0] sm:$0xff] %vm1202_vm6, %v1159_v38 }
 0x23d   : > { %v3846_v38 = vpop.f32.mrf.mxu0 }
 0x23e   : > { %v1157_v39 = vpop.permute.xlu1 %1156 }
 0x23f   : > { %1228 = vst.msk [vmem:[#allocation3 + $0xc8] sm:$0xff] %vm1202_vm6, %v1157_v39  ;;  %v1348_v42 = vpop.permute.xlu0 %1347  ;;  %v3848_v39 = vpop.f32.mrf.mxu0 }
 0x240   : > { %1420 = vst.msk [vmem:[#allocation3 + $0xc0] sm:$0xff] %vm1395_vm7, %v1348_v42  ;;  %v2330_v42 = vld [vmem:[%s3942_s3 + $0x8] sm:$0xff] }
 0x241   : > { %2397 = vmatprep.mubr.f32.mxu1 %v2330_v42 }
 0x242   : > { %v1161_v43 = vpop.permute.xlu1 %1160 }
 0x243   : > { %1230 = vst.msk [vmem:[#allocation3 + $0xd8] sm:$0xff] %vm1202_vm6, %v1161_v43  ;;  %v1352_v44 = vpop.permute.xlu0 %1351  ;;  %v3853_v43 = vpop.f32.mrf.mxu0 }
 0x244   : > { %1422 = vst.msk [vmem:[#allocation3 + $0xd0] sm:$0xff] %vm1395_vm7, %v1352_v44 }
 0x245   : > { %v3855_v44 = vpop.f32.mrf.mxu0 }
 0x246   : > { %v1350_v45 = vpop.permute.xlu1 %1349 }
 0x247   : > { %1421 = vst.msk [vmem:[#allocation3 + $0xc8] sm:$0xff] %vm1395_vm7, %v1350_v45  ;;  %v1542_v31 = vpop.permute.xlu0 %1541  ;;  %v3857_v45 = vpop.f32.mrf.mxu0 }
 0x248   : > { %1614 = vst.msk [vmem:[#allocation3 + $0xc0] sm:$0xff] %vm1589_vm8, %v1542_v31 }
 0x249   : > { %v3859_v31 = vpop.f32.mrf.mxu0 }
 0x24a   : > { %v1354_v46 = vpop.permute.xlu1 %1353 }
 0x24b   : > { %1423 = vst.msk [vmem:[#allocation3 + $0xd8] sm:$0xff] %vm1395_vm7, %v1354_v46  ;;  %v1546_v47 = vpop.permute.xlu0 %1545  ;;  %v3861_v46 = vpop.f32.mrf.mxu0 }
 0x24c   : > { %1616 = vst.msk [vmem:[#allocation3 + $0xd0] sm:$0xff] %vm1589_vm8, %v1546_v47 }
 0x24d   : > { %v2663_v47 = vpop.f32.mrf.mxu0 }
 0x24e   : > { %v1544_v32 = vpop.permute.xlu1 %1543 }
 0x24f   : > { %1615 = vst.msk [vmem:[#allocation3 + $0xc8] sm:$0xff] %vm1589_vm8, %v1544_v32  ;;  %v1735_v50 = vpop.permute.xlu0 %1734  ;;  %v2202_v32 = vpop.f32.mrf.mxu0 }
 0x250   : > { %1807 = vst.msk [vmem:[#allocation3 + $0xc0] sm:$0xff] %vm1782_vm9, %v1735_v50 }
 0x251   : > { %v2664_v50 = vpop.f32.mrf.mxu0 }
 0x252   : > { %v1548_v51 = vpop.permute.xlu1 %1547 }
 0x253   : > { %1617 = vst.msk [vmem:[#allocation3 + $0xd8] sm:$0xff] %vm1589_vm8, %v1548_v51  ;;  %v1739_v52 = vpop.permute.xlu0 %1738  ;;  %v2205_v51 = vpop.f32.mrf.mxu0 }
 0x254   : > { %1809 = vst.msk [vmem:[#allocation3 + $0xd0] sm:$0xff] %vm1782_vm9, %v1739_v52 }
 0x256   : > { %v1737_v34 = vpop.permute.xlu1 %1736 }
 0x257   : > { %1808 = vst.msk [vmem:[#allocation3 + $0xc8] sm:$0xff] %vm1782_vm9, %v1737_v34  ;;  %v1928_v53 = vpop.permute.xlu0 %1927 }
 0x258   : > { %2000 = vst.msk [vmem:[#allocation3 + $0xc0] sm:$0xff] %vm1975_vm10, %v1928_v53 }
 0x25a   : > { %v1741_v55 = vpop.permute.xlu1 %1740 }
 0x25b   : > { %1810 = vst.msk [vmem:[#allocation3 + $0xd8] sm:$0xff] %vm1782_vm9, %v1741_v55  ;;  %v584_v36 = vpop.permute.xlu0 %583 }
 0x25c   : > { %652 = vst.msk [vmem:[#allocation3 + $0xe0] sm:$0xff] %vm623_vm3, %v584_v36 }
 0x25e   : > { %v1930_v57 = vpop.permute.xlu1 %1929 }
 0x25f   : > { %2001 = vst.msk [vmem:[#allocation3 + $0xc8] sm:$0xff] %vm1975_vm10, %v1930_v57  ;;  %v1932_v62 = vpop.permute.xlu0 %1931  ;;  %v2032_v41 = vld [vmem:[#allocation3 + $0xc0] sm:$0xff] }
 0x260   : > { %2002 = vst.msk [vmem:[#allocation3 + $0xd0] sm:$0xff] %vm1975_vm10, %v1932_v62 }
 0x262   : > { %v586_v60 = vpop.permute.xlu1 %585 }
 0x263   : > { %653 = vst.msk [vmem:[#allocation3 + $0xe8] sm:$0xff] %vm623_vm3, %v586_v60  ;;  %v588_v63 = vpop.permute.xlu0 %587 }
 0x264   : > { %654 = vst.msk [vmem:[#allocation3 + $0xf0] sm:$0xff] %vm623_vm3, %v588_v63 }
 0x266   : > { %v1934_v54 = vpop.permute.xlu1 %1933  ;;  %v2033_v0 = vld [vmem:[#allocation3 + $0xc8] sm:$0xff] }
 0x267   : > { %2003 = vst.msk [vmem:[#allocation3 + $0xd8] sm:$0xff] %vm1975_vm10, %v1934_v54  ;;  %v2052_v1 = vpack.c.bf16 %v2033_v0, %v2032_v41  ;;  %v777_v61 = vpop.permute.xlu0 %776  ;;  %v2034_v3 = vld [vmem:[#allocation3 + $0xd0] sm:$0xff] }
 0x268   : > { %845 = vst.msk [vmem:[#allocation3 + $0xe0] sm:$0xff] %vm816_vm4, %v777_v61 }
 0x269   : > { %2677 = vmatprep.mubr.msk.bf16.mxu0 %vm2083_vm11, %v2052_v1 }
 0x26a   : > { %v590_v2 = vpop.permute.xlu1 %589 }
 0x26b   : > { %655 = vst.msk [vmem:[#allocation3 + $0xf8] sm:$0xff] %vm623_vm3, %v590_v2  ;;  %v781_v4 = vpop.permute.xlu0 %780 }
 0x26c   : > { %847 = vst.msk [vmem:[#allocation3 + $0xf0] sm:$0xff] %vm816_vm4, %v781_v4 }
 0x26e   : > { %v779_v5 = vpop.permute.xlu1 %778  ;;  %v2035_v8 = vld [vmem:[#allocation3 + $0xd8] sm:$0xff] }
 0x26f   : > { %846 = vst.msk [vmem:[#allocation3 + $0xe8] sm:$0xff] %vm816_vm4, %v779_v5  ;;  %v2053_v9 = vpack.c.bf16 %v2035_v8, %v2034_v3  ;;  %v970_v10 = vpop.permute.xlu0 %969  ;;  %v3876_v8 = vld [vmem:[%s3941_s2] ss:$0 sm:$0xff] }
 0x270   : > { %1038 = vst.msk [vmem:[#allocation3 + $0xe0] sm:$0xff] %vm1009_vm5, %v970_v10  ;;  %v2198_v42 = vadd.f32 %v3859_v31, %v3876_v8 }
 0x271   : > { %2678 = vmatmul.mubr.msk.bf16.gmra.mxu0 %vm2083_vm11, %v2053_v9  ;;  %v2667_v52 = vpop.f32.mrf.mxu0 }
 0x272   : > { %v783_v11 = vpop.permute.xlu1 %782 }
 0x273   : > { %848 = vst.msk [vmem:[#allocation3 + $0xf8] sm:$0xff] %vm816_vm4, %v783_v11  ;;  %v974_v12 = vpop.permute.xlu0 %973  ;;  %v2218_v34 = vpop.f32.mrf.mxu0 }
 0x274   : > { %1040 = vst.msk [vmem:[#allocation3 + $0xf0] sm:$0xff] %vm1009_vm5, %v974_v12 }
 0x275   : > { %v2668_v53 = vpop.f32.mrf.mxu0 }
 0x276   : > { %v972_v13 = vpop.permute.xlu1 %971  ;;  %v2230_v9 = vadd.f32 %v2668_v53, %v3876_v8 }
 0x277   : > { %1039 = vst.msk [vmem:[#allocation3 + $0xe8] sm:$0xff] %vm1009_vm5, %v972_v13  ;;  %v1163_v14 = vpop.permute.xlu0 %1162  ;;  %v2221_v55 = vpop.f32.mrf.mxu0  ;;  %v2227_v13 = vadd.f32 %v2667_v52, %v3876_v8  ;;  %v2195_v52 = vadd.f32 %v3855_v44, %v3876_v8  ;;  %v2187_v44 = vadd.f32 %v3876_v8, %v3857_v45 }
 0x278   : > { %1231 = vst.msk [vmem:[#allocation3 + $0xe0] sm:$0xff] %vm1202_vm6, %v1163_v14 }
 0x279   : > { %v2301_v45 = vmax.f32 %v2187_v44, 0.0 }
 0x27a   : > { %v976_v15 = vpop.permute.xlu1 %975 }
 0x27b   : > { %1041 = vst.msk [vmem:[#allocation3 + $0xf8] sm:$0xff] %vm1009_vm5, %v976_v15  ;;  %v1167_v56 = vpop.permute.xlu0 %1166 }
 0x27c   : > { %1233 = vst.msk [vmem:[#allocation3 + $0xf0] sm:$0xff] %vm1202_vm6, %v1167_v56 }
 0x27e   : > { %v1165_v16 = vpop.permute.xlu1 %1164 }
 0x27f   : > { %1232 = vst.msk [vmem:[#allocation3 + $0xe8] sm:$0xff] %vm1202_vm6, %v1165_v16  ;;  %v1356_v17 = vpop.permute.xlu0 %1355  ;;  %v2312_v16 = vmax.f32 %v2230_v9, 0.0 }
 0x280   : > { %1424 = vst.msk [vmem:[#allocation3 + $0xe0] sm:$0xff] %vm1395_vm7, %v1356_v17  ;;  %v2222_v17 = vadd.f32 %v3876_v8, %v2221_v55  ;;  %v2304_v55 = vmax.f32 %v2198_v42, 0.0 }
 0x282   : > { %v1169_v40 = vpop.permute.xlu1 %1168 }
 0x283   : > { %1234 = vst.msk [vmem:[#allocation3 + $0xf8] sm:$0xff] %vm1202_vm6, %v1169_v40  ;;  %v1360_v18 = vpop.permute.xlu0 %1359 }
 0x284   : > { %1426 = vst.msk [vmem:[#allocation3 + $0xf0] sm:$0xff] %vm1395_vm7, %v1360_v18 }
 0x286   : > { %v1358_v19 = vpop.permute.xlu1 %1357 }
 0x287   : > { %1425 = vst.msk [vmem:[#allocation3 + $0xe8] sm:$0xff] %vm1395_vm7, %v1358_v19  ;;  %v1550_v20 = vpop.permute.xlu0 %1549  ;;  %v2311_v19 = vmax.f32 %v2227_v13, 0.0 }
 0x288   : > { %1618 = vst.msk [vmem:[#allocation3 + $0xe0] sm:$0xff] %vm1589_vm8, %v1550_v20  ;;  %v2219_v20 = vadd.f32 %v3876_v8, %v2218_v34 }
 0x28a   : > { %v1362_v21 = vpop.permute.xlu1 %1361 }
 0x28b   : > { %1427 = vst.msk [vmem:[#allocation3 + $0xf8] sm:$0xff] %vm1395_vm7, %v1362_v21  ;;  %v1554_v22 = vpop.permute.xlu0 %1553 }
 0x28c   : > { %1620 = vst.msk [vmem:[#allocation3 + $0xf0] sm:$0xff] %vm1589_vm8, %v1554_v22 }
 0x28e   : > { %v1552_v23 = vpop.permute.xlu1 %1551 }
 0x28f   : > { %1619 = vst.msk [vmem:[#allocation3 + $0xe8] sm:$0xff] %vm1589_vm8, %v1552_v23  ;;  %v1743_v24 = vpop.permute.xlu0 %1742  ;;  %v2214_v23 = vadd.f32 %v2664_v50, %v3876_v8 }
 0x290   : > { %1811 = vst.msk [vmem:[#allocation3 + $0xe0] sm:$0xff] %vm1782_vm9, %v1743_v24  ;;  %v2310_v24 = vmax.f32 %v2222_v17, 0.0 }
 0x292   : > { %v1556_v25 = vpop.permute.xlu1 %1555 }
 0x293   : > { %1621 = vst.msk [vmem:[#allocation3 + $0xf8] sm:$0xff] %vm1589_vm8, %v1556_v25  ;;  %v1747_v26 = vpop.permute.xlu0 %1746 }
 0x294   : > { %1813 = vst.msk [vmem:[#allocation3 + $0xf0] sm:$0xff] %vm1782_vm9, %v1747_v26 }
 0x296   : > { %v1745_v58 = vpop.permute.xlu1 %1744 }
 0x297   : > { %1812 = vst.msk [vmem:[#allocation3 + $0xe8] sm:$0xff] %vm1782_vm9, %v1745_v58  ;;  %v1936_v27 = vpop.permute.xlu0 %1935  ;;  %v2211_v58 = vadd.f32 %v2663_v47, %v3876_v8 }
 0x298   : > { %2004 = vst.msk [vmem:[#allocation3 + $0xe0] sm:$0xff] %vm1975_vm10, %v1936_v27  ;;  %v2309_v27 = vmax.f32 %v2219_v20, 0.0 }
 0x29a   : > { %v1749_v6 = vpop.permute.xlu1 %1748 }
 0x29b   : > { %1814 = vst.msk [vmem:[#allocation3 + $0xf8] sm:$0xff] %vm1782_vm9, %v1749_v6  ;;  %v1940_v29 = vpop.permute.xlu0 %1939 }
 0x29c   : > { %2006 = vst.msk [vmem:[#allocation3 + $0xf0] sm:$0xff] %vm1975_vm10, %v1940_v29 }
 0x29e   : > { %v1938_v28 = vpop.permute.xlu1 %1937 }
 0x29f   : > { %2005 = vst.msk [vmem:[#allocation3 + $0xe8] sm:$0xff] %vm1975_vm10, %v1938_v28  ;;  %v2036_v48 = vld [vmem:[#allocation3 + $0xe0] sm:$0xff]  ;;  %v2308_v28 = vmax.f32 %v2214_v23, 0.0 }
 0x2a2   : > { %v1942_v59 = vpop.permute.xlu1 %1941 }
 0x2a3   : > { %2007 = vst.msk [vmem:[#allocation3 + $0xf8] sm:$0xff] %vm1975_vm10, %v1942_v59  ;;  %v2038_v33 = vld [vmem:[#allocation3 + $0xf0] sm:$0xff]  ;;  %v2206_v59 = vadd.f32 %v3876_v8, %v2205_v51 }
 0x2a5   : > { %v2306_v47 = vmax.f32 %v2206_v59, 0.0 }
 0x2a6   : > { %v2037_v30 = vld [vmem:[#allocation3 + $0xe8] sm:$0xff] }
 0x2a7   : > { %v2054_v7 = vpack.c.bf16 %v2037_v30, %v2036_v48 }
 0x2a9   : > { %2681 = vmatprep.mubr.msk.bf16.mxu0 %vm2083_vm11, %v2054_v7  ;;  %v2307_v7 = vmax.f32 %v2211_v58, 0.0 }
 0x2aa   : > { %v2039_v49 = vld [vmem:[#allocation3 + $0xf8] sm:$0xff] }
 0x2ab   : > { %v2055_v37 = vpack.c.bf16 %v2039_v49, %v2038_v33  ;;  %v2203_v33 = vadd.f32 %v3876_v8, %v2202_v32 }
 0x2ad   : > { %2682 = vmatmul.mubr.msk.bf16.gmra.mxu0 %vm2083_vm11, %v2055_v37  ;;  %v2305_v34 = vmax.f32 %v2203_v33, 0.0 }
 0x2b1   : > { %v3863_v36 = vpop.f32.mrf.mxu0 }
 0x2b3   : > { %v3865_v57 = vpop.f32.mrf.mxu0 }
 0x2b5   : > { %v3867_v62 = vpop.f32.mrf.mxu0 }
 0x2b7   : > { %v3869_v60 = vpop.f32.mrf.mxu0 }
 0x2f1   : > { %v2675_v41 = vpop.f32.mrf.mxu0 }
 0x2f2   : > { %v2259_v50 = vadd.f32 %v2675_v41, %v3876_v8 }
 0x2f3   : > { %v3871_v63 = vpop.f32.mrf.mxu0 }
 0x2f4   : > { %v2319_v31 = vmax.f32 %v2259_v50, 0.0  ;;  %v2251_v41 = vadd.f32 %v3876_v8, %v3871_v63 }
 0x2f5   : > { %v2676_v54 = vpop.f32.mrf.mxu0 }
 0x2f6   : > { %v2262_v49 = vadd.f32 %v2676_v54, %v3876_v8  ;;  %v2190_v54 = vadd.f32 %v3876_v8, %v3861_v46  ;;  %v2317_v63 = vmax.f32 %v2251_v41, 0.0 }
 0x2f7   : > { %v2253_v0 = vpop.f32.mrf.mxu0 }
 0x2f8   : > { %v2320_v32 = vmax.f32 %v2262_v49, 0.0  ;;  %v2254_v53 = vadd.f32 %v3876_v8, %v2253_v0  ;;  %v2302_v46 = vmax.f32 %v2190_v54, 0.0 }
 0x2fa   : > { %v2318_v0 = vmax.f32 %v2254_v53, 0.0 }
 0x331   : > { %v2679_v1 = vpop.f32.mrf.mxu0 }
 0x332   : > { %v2275_v25 = vadd.f32 %v2679_v1, %v3876_v8  ;;  %v2303_v1 = vmax.f32 %v2195_v52, 0.0 }
 0x333   : > { %v2266_v61 = vpop.f32.mrf.mxu0 }
 0x334   : > { %v2323_v48 = vmax.f32 %v2275_v25, 0.0  ;;  %v2267_v30 = vadd.f32 %v3876_v8, %v2266_v61  ;;  %v2246_v61 = vadd.f32 %v3867_v62, %v3876_v8  ;;  %v2238_v62 = vadd.f32 %v3876_v8, %v3869_v60 }
 0x335   : > { %v2680_v2 = vpop.f32.mrf.mxu0 }
 0x336   : > { %v2278_v21 = vadd.f32 %v2680_v2, %v3876_v8  ;;  %v2321_v51 = vmax.f32 %v2267_v30, 0.0  ;;  %v2182_v2 = vadd.f32 %v3848_v39, %v3876_v8  ;;  %v2174_v39 = vadd.f32 %v3876_v8, %v3853_v43  ;;  %v2329_v43 = vld [vmem:[%s3942_s3] sm:$0xff] }
 0x337   : > { %v2269_v3 = vpop.f32.mrf.mxu0 }
 0x338   : > { %v2324_v6 = vmax.f32 %v2278_v21, 0.0  ;;  %v2270_v29 = vadd.f32 %v3876_v8, %v2269_v3  ;;  %v2243_v3 = vadd.f32 %v3863_v36, %v3876_v8  ;;  %v2300_v9 = vmax.f32 %v2182_v2, 0.0 }
 0x339   : > { %v2235_v36 = vadd.f32 %v3876_v8, %v3865_v57  ;;  %v2298_v60 = vmax.f32 %v2174_v39, 0.0  ;;  %v2332_v57 = vld [vmem:[%s3942_s3 + $0x18] sm:$0xff] }
 0x33a   : > { %v2322_v37 = vmax.f32 %v2270_v29, 0.0 }
 0x33b   : > { %v2313_v13 = vmax.f32 %v2235_v36, 0.0 }
 0x36d   : > { %v2683_v4 = vpop.f32.mrf.mxu0 }
 0x36e   : > { %v2291_v11 = vadd.f32 %v2683_v4, %v3876_v8  ;;  %v2179_v4 = vadd.f32 %v3844_v35, %v3876_v8  ;;  %v2171_v35 = vadd.f32 %v3876_v8, %v3846_v38  ;;  %v2331_v38 = vld [vmem:[%s3942_s3 + $0x10] sm:$0xff] }
 0x36f   : > { %v2282_v5 = vpop.f32.mrf.mxu0 }
 0x370   : > { %v2327_v40 = vmax.f32 %v2291_v11, 0.0  ;;  %v2283_v18 = vadd.f32 %v3876_v8, %v2282_v5  ;;  %v2316_v5 = vmax.f32 %v2246_v61, 0.0  ;;  %v2299_v11 = vmax.f32 %v2179_v4, 0.0 }
 0x371   : > { %v2684_v10 = vpop.f32.mrf.mxu0 }
 0x372   : > { %v2294_v12 = vadd.f32 %v2684_v10, %v3876_v8  ;;  %v2325_v26 = vmax.f32 %v2283_v18, 0.0  ;;  %v2315_v10 = vmax.f32 %v2243_v3, 0.0 }
 0x373   : > { %v2285_v14 = vpop.f32.mrf.mxu0 }
 0x374   : > { %v2286_v15 = vadd.f32 %v3876_v8, %v2285_v14  ;;  %v2328_v56 = vmax.f32 %v2294_v12, 0.0  ;;  %v2314_v12 = vmax.f32 %v2238_v62, 0.0  ;;  %v2297_v14 = vmax.f32 %v2171_v35, 0.0 }
 0x376   : > { %2609 = vmatprep.subr.mxu1 %v2328_v56  ;;  %v2326_v22 = vmax.f32 %v2286_v15, 0.0 }
 0x377   : > { %2610 = vmatpush3.msra.mxu1 %v2312_v16 }
 0x378   : > { %2611 = vmatprep.subr.mxu1 %v2327_v40 }
 0x379   : > { %2612 = vmatpush3.msra.mxu1 %v2311_v19 }
 0x37a   : > { %2613 = vmatprep.subr.mxu1 %v2326_v22 }
 0x37b   : > { %2614 = vmatpush3.msra.mxu1 %v2310_v24 }
 0x37c   : > { %2615 = vmatprep.subr.mxu1 %v2325_v26 }
 0x37d   : > { %2616 = vmatpush3.msra.mxu1 %v2309_v27 }
 0x37e   : > { %2617 = vmatprep.subr.mxu1 %v2324_v6 }
 0x37f   : > { %2618 = vmatpush3.msra.mxu1 %v2308_v28 }
 0x380   : > { %2619 = vmatprep.subr.mxu1 %v2323_v48 }
 0x381   : > { %2620 = vmatpush3.msra.mxu1 %v2307_v7 }
 0x382   : > { %2621 = vmatprep.subr.mxu1 %v2322_v37 }
 0x383   : > { %2622 = vmatpush3.msra.mxu1 %v2306_v47 }
 0x384   : > { %2623 = vmatprep.subr.mxu1 %v2321_v51 }
 0x385   : > { %2624 = vmatpush3.msra.mxu1 %v2305_v34 }
 0x386   : > { %2625 = vmatprep.subr.mxu1 %v2320_v32 }
 0x387   : > { %2626 = vmatpush3.msra.mxu1 %v2304_v55 }
 0x388   : > { %2627 = vmatprep.subr.mxu1 %v2319_v31 }
 0x389   : > { %2628 = vmatpush3.msra.mxu1 %v2303_v1 }
 0x38a   : > { %2629 = vmatprep.subr.mxu1 %v2318_v0 }
 0x38b   : > { %2630 = vmatpush3.msra.mxu1 %v2302_v46 }
 0x38c   : > { %2631 = vmatprep.subr.mxu1 %v2317_v63 }
 0x38d   : > { %2632 = vmatpush3.msra.mxu1 %v2301_v45 }
 0x38e   : > { %2633 = vmatprep.subr.mxu1 %v2316_v5 }
 0x38f   : > { %2634 = vmatpush3.msra.mxu1 %v2300_v9 }
 0x390   : > { %2635 = vmatprep.subr.mxu1 %v2315_v10 }
 0x391   : > { %2636 = vmatpush3.msra.mxu1 %v2299_v11 }
 0x392   : > { %2637 = vmatprep.subr.mxu1 %v2314_v12 }
 0x393   : > { %2638 = vmatpush3.msra.mxu1 %v2298_v60 }
 0x394   : > { %2639 = vmatprep.subr.mxu1 %v2313_v13 }
 0x395   : > { %2640 = vmatpush3.msra.mxu1 %v2297_v14 }
 0x396   : > { %2398 = vmatmul.mubr.f32.vlgmr.msra.gmra.mxu1 %v2329_v43 }
 0x397   : > { %2402 = vmatprep.mubr.f32.mxu1 %v2332_v57 }
 0x39a   : > { %2403 = vmatmul.mubr.f32.gmra.mxu1 %v2331_v38 }
 0x456   : > { %v2641_v8 = vpop.f32.mrf.mxu1 }
 0x458   : > { %v2642_v15 = vpop.f32.mrf.mxu1 }
 0x459   : > { %v2643_v56 = vadd.f32 %v2642_v15, %v2641_v8 }
 0x45a   : > { %v2644_v16 = vpop.f32.mrf.mxu1 }
 0x45b   : > { %v2509_v17 = vpack.c.bf16 %v2643_v56, %v2643_v56 }
 0x45c   : > { %v2645_v40 = vpop.f32.mrf.mxu1 }
 0x45d   : > { %2417 = vst.msk [vmem:[%s197_s24] sm:$0xf] %vm2416_vm12, %v2509_v17  ;;  %v2646_v18 = vadd.f32 %v2645_v40, %v2644_v16 }
 0x45f   : > { %v2510_v19 = vpack.c.bf16 %v2646_v18, %v2646_v18 }
 0x461   : > { %2418 = vst.msk [vmem:[%s197_s24 + $0x4] sm:$0xf] %vm2416_vm12, %v2510_v19 }
 0x462 PF: > { %s14_s15 = sadd.s32 1, %s2712_s15  }
 0x463   : > { %p11_p4 = scmp.ge.s32.totalorder %s14_s15, 4  }
 0x465   :  { %13 = sbr.rel (!%p11_p4) target bundleno = 1 (0x1), region = 69 }

</bundles_post_ra>
